<compile_context>
chip_gen: v7x
topology: tpu7x:2x2x1
jax: 0.10.0
libtpu: 0.0.40
codegen_flags: <defaults>
</compile_context>

<pallas_src>
import functools

import jax
import jax.numpy as jnp
from jax.experimental import pallas as pl
from jax.experimental.pallas import tpu as pltpu


# Set to jnp.bfloat16 for v6e/v7x at production sizes (f32 accumulation is kept
# via preferred_element_type); elementwise math stays f32 either way (v5e has
# no bf16 VPU/EUP).
_MXU_DTYPE = jnp.float32


# ---------------------------------------------------------------------------
# Single fused Pallas kernel: whole Encoder_T forward, VMEM-resident.
# ---------------------------------------------------------------------------
def _encoder_fused_kernel(
        # inputs
        patches_ref, patch_w_ref, patch_b_ref, cls_ref, pos_ref,
        ln1_g_ref, ln1_b_ref, qkv_w_ref, qkv_b_ref, attn_w_ref, attn_b_ref,
        ln2_g_ref, ln2_b_ref, fc1_w_ref, fc1_b_ref, fc2_w_ref, fc2_b_ref,
        lnf_g_ref, lnf_b_ref, proj_w_ref, proj_b_ref,
        # outputs
        proj_out_ref, feat_out_ref,
        *, batch, n_patch, heads, depth, eps):
    f32 = jnp.float32

    def mm(x, w):
        return jnp.dot(x.astype(_MXU_DTYPE), w.astype(_MXU_DTYPE),
                       preferred_element_type=f32)

    def layernorm(x, g, b):
        # one-pass: mean and E[x^2]; var = E[x^2] - mean^2
        mean = jnp.mean(x, axis=-1, keepdims=True)
        ex2 = jnp.mean(x * x, axis=-1, keepdims=True)
        var = jnp.maximum(ex2 - mean * mean, 0.0)
        return (x - mean) * jax.lax.rsqrt(var + eps) * g + b

    D = patch_w_ref.shape[1]
    S = n_patch + 1
    dh = D // heads
    scale = 1.0 / (float(dh) ** 0.5)

    # ---- patch embedding (stride-p conv == matmul on pre-patchified rows) ----
    tok = mm(patches_ref[...].astype(f32), patch_w_ref[...]) + patch_b_ref[...]
    cls = cls_ref[...]                                   # (1, D)

    # prepend CLS per batch element, add (pre-tiled) positional embedding
    pieces = []
    for b in range(batch):
        pieces.append(cls)
        pieces.append(tok[b * n_patch:(b + 1) * n_patch, :])
    x = jnp.concatenate(pieces, axis=0) + pos_ref[...]   # (B*S, D)

    # ---- transformer blocks (statically unrolled, all VMEM-resident) ----
    for d in range(depth):
        # attention sub-block
        h = layernorm(x, ln1_g_ref[d], ln1_b_ref[d])
        qkv = mm(h, qkv_w_ref[d]) + qkv_b_ref[d]         # (B*S, 3D)

        attn_rows = []
        for b in range(batch):
            qkv_blk = qkv[b * S:(b + 1) * S, :]          # (S, 3D) VMEM slice
            heads_out = []
            for hh in range(heads):
                q = qkv_blk[:, hh * dh:(hh + 1) * dh]                 # (S, dh)
                k = qkv_blk[:, D + hh * dh:D + (hh + 1) * dh]
                v = qkv_blk[:, 2 * D + hh * dh:2 * D + (hh + 1) * dh]
                s = jax.lax.dot_general(                  # q @ k^T, f32 acc
                    q, k, (((1,), (1,)), ((), ())),
                    preferred_element_type=f32) * scale
                s = s - jnp.max(s, axis=-1, keepdims=True)
                p = jnp.exp(s)
                # reciprocal on the EUP slot instead of a VALU divide
                p = p * pl.reciprocal(jnp.sum(p, axis=-1, keepdims=True),
                                      approx=True)
                heads_out.append(jnp.dot(p, v, preferred_element_type=f32))
            attn_rows.append(jnp.concatenate(heads_out, axis=-1))     # (S, D)
        attn = jnp.concatenate(attn_rows, axis=0)                     # (B*S, D)

        # attn projection + residual (fused)
        x = x + mm(attn, attn_w_ref[d]) + attn_b_ref[d]

        # MLP sub-block (LN -> fc1 + GELU -> fc2 + residual, fused)
        h2 = layernorm(x, ln2_g_ref[d], ln2_b_ref[d])
        m = mm(h2, fc1_w_ref[d]) + fc1_b_ref[d]
        # TODO(synk): PyTorch nn.GELU default is erf-exact; tanh-approx kept for
        # a guaranteed EUP (tanh) lowering path on all TPU generations.
        m = jax.nn.gelu(m, approximate=True)
        x = x + mm(m, fc2_w_ref[d]) + fc2_b_ref[d]

    # ---- final LN, CLS readout ('cls' mode), projector ----
    x = layernorm(x, lnf_g_ref[...], lnf_b_ref[...])
    feat = jnp.concatenate([x[b * S:b * S + 1, :] for b in range(batch)],
                           axis=0)                        # (B, D)  CLS rows
    proj = mm(feat, proj_w_ref[...]) + proj_b_ref[...]    # (B, emb_dim)

    feat_out_ref[...] = feat.astype(feat_out_ref.dtype)
    proj_out_ref[...] = proj.astype(proj_out_ref.dtype)


# ---------------------------------------------------------------------------
# Synthetic backbone + projector parameters (deterministic, no checkpoint).
# Per-block weights are stacked along a leading `depth` axis so one fused
# kernel can index them with a static loop.
# ---------------------------------------------------------------------------
def init_params(key, *, in_ch=3, patch=8, img=16, dim=32, heads=2, depth=2,
                mlp_ratio=4, emb_dim=16):
    n_patches = (img // patch) ** 2
    hidden = dim * mlp_ratio
    ks = iter(jax.random.split(key, 10))
    w = lambda k, shape: jax.random.normal(k, shape, jnp.float32) * 0.02

    return dict(
        patch=patch, heads=heads, depth=depth,
        patch_w=w(next(ks), (in_ch * patch * patch, dim)),
        patch_b=jnp.zeros((1, dim), jnp.float32),
        cls_token=w(next(ks), (1, dim)),
        pos_embed=w(next(ks), (n_patches + 1, dim)),
        ln1_g=jnp.ones((depth, 1, dim), jnp.float32),
        ln1_b=jnp.zeros((depth, 1, dim), jnp.float32),
        qkv_w=w(next(ks), (depth, dim, 3 * dim)),
        qkv_b=jnp.zeros((depth, 1, 3 * dim), jnp.float32),
        attn_w=w(next(ks), (depth, dim, dim)),
        attn_b=jnp.zeros((depth, 1, dim), jnp.float32),
        ln2_g=jnp.ones((depth, 1, dim), jnp.float32),
        ln2_b=jnp.zeros((depth, 1, dim), jnp.float32),
        fc1_w=w(next(ks), (depth, dim, hidden)),
        fc1_b=jnp.zeros((depth, 1, hidden), jnp.float32),
        fc2_w=w(next(ks), (depth, hidden, dim)),
        fc2_b=jnp.zeros((depth, 1, dim), jnp.float32),
        lnf_g=jnp.ones((1, dim), jnp.float32),
        lnf_b=jnp.zeros((1, dim), jnp.float32),
        # Encoder_T projector (en_mode='cls'): nn.Linear(gap_dim, emb_dim)
        proj_w=w(next(ks), (dim, emb_dim)),
        proj_b=jnp.zeros((1, emb_dim), jnp.float32),
    )


# ---------------------------------------------------------------------------
# Forward pass (Encoder_T.forward equivalent): returns (projector(feat), feat)
# ---------------------------------------------------------------------------
def encoder_t_forward(params, x):
    # input x is NCHW (B, C, H, W), as in the PyTorch module.
    B, C, H, W = x.shape
    p = params["patch"]
    heads, depth = params["heads"], params["depth"]
    nP = (H // p) * (W // p)
    S = nP + 1
    D = params["patch_w"].shape[1]
    E = params["proj_w"].shape[1]

    # Patchify (layout glue only): NCHW -> (B*nP, C*p*p); stride-p conv == matmul.
    xh = x.reshape(B, C, H // p, p, W // p, p)
    patches = xh.transpose(0, 2, 4, 1, 3, 5).reshape(B * nP, C * p * p)

    # Pre-tile positional embedding to the (B*S, D) token layout used in-kernel
    # (parameter-only preprocessing; constant-folded by XLA).
    pos = jnp.tile(params["pos_embed"], (B, 1))

    inputs = (
        patches, params["patch_w"], params["patch_b"], params["cls_token"], pos,
        params["ln1_g"], params["ln1_b"], params["qkv_w"], params["qkv_b"],
        params["attn_w"], params["attn_b"],
        params["ln2_g"], params["ln2_b"], params["fc1_w"], params["fc1_b"],
        params["fc2_w"], params["fc2_b"],
        params["lnf_g"], params["lnf_b"], params["proj_w"], params["proj_b"],
    )

    def full_spec(a):
        if a.ndim == 2:
            return pl.BlockSpec(a.shape, lambda i: (0, 0))
        return pl.BlockSpec(a.shape, lambda i: (0, 0, 0))

    kernel = functools.partial(_encoder_fused_kernel, batch=B, n_patch=nP,
                               heads=heads, depth=depth, eps=1e-5)

    proj, feat = pl.pallas_call(
        kernel,
        out_shape=(jax.ShapeDtypeStruct((B, E), x.dtype),
                   jax.ShapeDtypeStruct((B, D), x.dtype)),
        grid=(1,),
        in_specs=[full_spec(a) for a in inputs],
        out_specs=(pl.BlockSpec((B, E), lambda i: (0, 0)),
                   pl.BlockSpec((B, D), lambda i: (0, 0))),
        compiler_params=pltpu.CompilerParams(
            dimension_semantics=("arbitrary",)),
    )(*inputs)
    return proj, feat


if __name__ == "__main__":
    key = jax.random.PRNGKey(0)
    kx, kp = jax.random.split(key)

    # Small shapes: batch=2, RGB 16x16, patch=8 -> 4 patches + CLS = 5 tokens,
    # gap_dim=32, emb_dim=16.
    x = jax.random.normal(kx, (2, 3, 16, 16), dtype=jnp.float32)
    params = init_params(kp, in_ch=3, patch=8, img=16, dim=32, heads=2,
                         depth=2, mlp_ratio=4, emb_dim=16)

    fwd = jax.jit(lambda inp: encoder_t_forward(params, inp))
    proj, feat = fwd(x)
    jax.block_until_ready((proj, feat))

    assert proj.shape == (2, 16), proj.shape   # projector(feat)
    assert feat.shape == (2, 32), feat.shape   # backbone 'cls' representation
    assert jnp.all(jnp.isfinite(proj)) and jnp.all(jnp.isfinite(feat))
    print("KERNEL_OK")
</pallas_src>

<mosaic_0001>
module attributes {stable_mosaic.version = 11 : i64} {
  func.func @_encoder_fused_kernel(%arg0: i32, %arg1: memref<8x192xf32, #tpu.memory_space<vmem>>, %arg2: memref<192x32xf32, #tpu.memory_space<vmem>>, %arg3: memref<1x32xf32, #tpu.memory_space<vmem>>, %arg4: memref<1x32xf32, #tpu.memory_space<vmem>>, %arg5: memref<10x32xf32, #tpu.memory_space<vmem>>, %arg6: memref<2x1x32xf32, #tpu.memory_space<vmem>>, %arg7: memref<2x1x32xf32, #tpu.memory_space<vmem>>, %arg8: memref<2x32x96xf32, #tpu.memory_space<vmem>>, %arg9: memref<2x1x96xf32, #tpu.memory_space<vmem>>, %arg10: memref<2x32x32xf32, #tpu.memory_space<vmem>>, %arg11: memref<2x1x32xf32, #tpu.memory_space<vmem>>, %arg12: memref<2x1x32xf32, #tpu.memory_space<vmem>>, %arg13: memref<2x1x32xf32, #tpu.memory_space<vmem>>, %arg14: memref<2x32x128xf32, #tpu.memory_space<vmem>>, %arg15: memref<2x1x128xf32, #tpu.memory_space<vmem>>, %arg16: memref<2x128x32xf32, #tpu.memory_space<vmem>>, %arg17: memref<2x1x32xf32, #tpu.memory_space<vmem>>, %arg18: memref<1x32xf32, #tpu.memory_space<vmem>>, %arg19: memref<1x32xf32, #tpu.memory_space<vmem>>, %arg20: memref<32x16xf32, #tpu.memory_space<vmem>>, %arg21: memref<1x16xf32, #tpu.memory_space<vmem>>, %arg22: memref<2x16xf32, #tpu.memory_space<vmem>>, %arg23: memref<2x32xf32, #tpu.memory_space<vmem>>) attributes {dimension_semantics = [#tpu.dimension_semantics<arbitrary>], iteration_bounds = array<i64: 1>, scalar_prefetch = 0 : i64, scratch_operands = 0 : i64, tpu.core_type = #tpu.core_type<tc>, window_params = [{pipeline_mode = #tpu.pipeline_mode<synchronous>, transform_indices = @transform_0, window_bounds = array<i64: 8, 192>}, {pipeline_mode = #tpu.pipeline_mode<synchronous>, transform_indices = @transform_1, window_bounds = array<i64: 192, 32>}, {pipeline_mode = #tpu.pipeline_mode<synchronous>, transform_indices = @transform_2, window_bounds = array<i64: 1, 32>}, {pipeline_mode = #tpu.pipeline_mode<synchronous>, transform_indices = @transform_3, window_bounds = array<i64: 1, 32>}, {pipeline_mode = #tpu.pipeline_mode<synchronous>, transform_indices = @transform_4, window_bounds = array<i64: 10, 32>}, {pipeline_mode = #tpu.pipeline_mode<synchronous>, transform_indices = @transform_5, window_bounds = array<i64: 2, 1, 32>}, {pipeline_mode = #tpu.pipeline_mode<synchronous>, transform_indices = @transform_6, window_bounds = array<i64: 2, 1, 32>}, {pipeline_mode = #tpu.pipeline_mode<synchronous>, transform_indices = @transform_7, window_bounds = array<i64: 2, 32, 96>}, {pipeline_mode = #tpu.pipeline_mode<synchronous>, transform_indices = @transform_8, window_bounds = array<i64: 2, 1, 96>}, {pipeline_mode = #tpu.pipeline_mode<synchronous>, transform_indices = @transform_9, window_bounds = array<i64: 2, 32, 32>}, {pipeline_mode = #tpu.pipeline_mode<synchronous>, transform_indices = @transform_10, window_bounds = array<i64: 2, 1, 32>}, {pipeline_mode = #tpu.pipeline_mode<synchronous>, transform_indices = @transform_11, window_bounds = array<i64: 2, 1, 32>}, {pipeline_mode = #tpu.pipeline_mode<synchronous>, transform_indices = @transform_12, window_bounds = array<i64: 2, 1, 32>}, {pipeline_mode = #tpu.pipeline_mode<synchronous>, transform_indices = @transform_13, window_bounds = array<i64: 2, 32, 128>}, {pipeline_mode = #tpu.pipeline_mode<synchronous>, transform_indices = @transform_14, window_bounds = array<i64: 2, 1, 128>}, {pipeline_mode = #tpu.pipeline_mode<synchronous>, transform_indices = @transform_15, window_bounds = array<i64: 2, 128, 32>}, {pipeline_mode = #tpu.pipeline_mode<synchronous>, transform_indices = @transform_16, window_bounds = array<i64: 2, 1, 32>}, {pipeline_mode = #tpu.pipeline_mode<synchronous>, transform_indices = @transform_17, window_bounds = array<i64: 1, 32>}, {pipeline_mode = #tpu.pipeline_mode<synchronous>, transform_indices = @transform_18, window_bounds = array<i64: 1, 32>}, {pipeline_mode = #tpu.pipeline_mode<synchronous>, transform_indices = @transform_19, window_bounds = array<i64: 32, 16>}, {pipeline_mode = #tpu.pipeline_mode<synchronous>, transform_indices = @transform_20, window_bounds = array<i64: 1, 16>}, {pipeline_mode = #tpu.pipeline_mode<synchronous>, transform_indices = @transform_21, window_bounds = array<i64: 2, 16>}, {pipeline_mode = #tpu.pipeline_mode<synchronous>, transform_indices = @transform_22, window_bounds = array<i64: 2, 32>}]} {
    %c0 = arith.constant 0 : index
    %c0_0 = arith.constant 0 : index
    %0 = vector.load %arg1[%c0, %c0_0] : memref<8x192xf32, #tpu.memory_space<vmem>>, vector<8x192xf32>
    %c0_1 = arith.constant 0 : index
    %c0_2 = arith.constant 0 : index
    %1 = vector.load %arg2[%c0_1, %c0_2] : memref<192x32xf32, #tpu.memory_space<vmem>>, vector<192x32xf32>
    %cst = arith.constant dense<0.000000e+00> : vector<8x32xf32>
    %2 = tpu.matmul %0, %1, %cst {dimension_numbers = #tpu.dot_dimension_numbers<[1], [0], [0], [1], [0, 0, 1, 1], [], []>} : vector<8x192xf32>, vector<192x32xf32>, vector<8x32xf32> -> vector<8x32xf32>
    %c0_3 = arith.constant 0 : index
    %c0_4 = arith.constant 0 : index
    %3 = vector.load %arg3[%c0_3, %c0_4] : memref<1x32xf32, #tpu.memory_space<vmem>>, vector<1x32xf32>
    %4 = vector.broadcast %3 : vector<1x32xf32> to vector<8x32xf32>
    %5 = arith.addf %2, %4 : vector<8x32xf32>
    %c0_5 = arith.constant 0 : index
    %c0_6 = arith.constant 0 : index
    %6 = vector.load %arg4[%c0_5, %c0_6] : memref<1x32xf32, #tpu.memory_space<vmem>>, vector<1x32xf32>
    %7 = vector.extract_strided_slice %5 {offsets = [0, 0], sizes = [4, 32], strides = [1, 1]} : vector<8x32xf32> to vector<4x32xf32>
    %8 = vector.extract_strided_slice %5 {offsets = [4, 0], sizes = [4, 32], strides = [1, 1]} : vector<8x32xf32> to vector<4x32xf32>
    %9 = tpu.concatenate %6, %7, %6, %8 in 0 : vector<1x32xf32>, vector<4x32xf32>, vector<1x32xf32>, vector<4x32xf32> -> vector<10x32xf32>
    %c0_7 = arith.constant 0 : index
    %c0_8 = arith.constant 0 : index
    %10 = vector.load %arg5[%c0_7, %c0_8] : memref<10x32xf32, #tpu.memory_space<vmem>>, vector<10x32xf32>
    %11 = arith.addf %9, %10 : vector<10x32xf32>
    %c0_9 = arith.constant 0 : index
    %c0_10 = arith.constant 0 : index
    %c0_11 = arith.constant 0 : index
    %12 = vector.load %arg6[%c0_9, %c0_10, %c0_11] : memref<2x1x32xf32, #tpu.memory_space<vmem>>, vector<1x1x32xf32>
    %13 = vector.shape_cast %12 : vector<1x1x32xf32> to vector<1x32xf32>
    %c0_12 = arith.constant 0 : index
    %c0_13 = arith.constant 0 : index
    %c0_14 = arith.constant 0 : index
    %14 = vector.load %arg7[%c0_12, %c0_13, %c0_14] : memref<2x1x32xf32, #tpu.memory_space<vmem>>, vector<1x1x32xf32>
    %15 = vector.shape_cast %14 : vector<1x1x32xf32> to vector<1x32xf32>
    %cst_15 = arith.constant dense<0.000000e+00> : vector<10xf32>
    %16 = vector.multi_reduction <add>, %11, %cst_15 [1] : vector<10x32xf32> to vector<10xf32>
    %17 = vector.shape_cast %16 : vector<10xf32> to vector<10x1xf32>
    %cst_16 = arith.constant 3.200000e+01 : f32
    %18 = vector.broadcast %cst_16 : f32 to vector<10x1xf32>
    %19 = arith.divf %17, %18 : vector<10x1xf32>
    %20 = arith.mulf %11, %11 : vector<10x32xf32>
    %cst_17 = arith.constant dense<0.000000e+00> : vector<10xf32>
    %21 = vector.multi_reduction <add>, %20, %cst_17 [1] : vector<10x32xf32> to vector<10xf32>
    %22 = vector.shape_cast %21 : vector<10xf32> to vector<10x1xf32>
    %cst_18 = arith.constant 3.200000e+01 : f32
    %23 = vector.broadcast %cst_18 : f32 to vector<10x1xf32>
    %24 = arith.divf %22, %23 : vector<10x1xf32>
    %25 = arith.mulf %19, %19 : vector<10x1xf32>
    %26 = arith.subf %24, %25 : vector<10x1xf32>
    %cst_19 = arith.constant 0.000000e+00 : f32
    %27 = vector.broadcast %cst_19 : f32 to vector<10x1xf32>
    %28 = arith.maximumf %26, %27 : vector<10x1xf32>
    %29 = vector.broadcast %19 : vector<10x1xf32> to vector<10x32xf32>
    %30 = arith.subf %11, %29 : vector<10x32xf32>
    %cst_20 = arith.constant 9.99999974E-6 : f32
    %31 = vector.broadcast %cst_20 : f32 to vector<10x1xf32>
    %32 = arith.addf %28, %31 : vector<10x1xf32>
    %33 = math.rsqrt %32 : vector<10x1xf32>
    %34 = vector.broadcast %33 : vector<10x1xf32> to vector<10x32xf32>
    %35 = arith.mulf %30, %34 : vector<10x32xf32>
    %36 = vector.broadcast %13 : vector<1x32xf32> to vector<10x32xf32>
    %37 = arith.mulf %35, %36 : vector<10x32xf32>
    %38 = vector.broadcast %15 : vector<1x32xf32> to vector<10x32xf32>
    %39 = arith.addf %37, %38 : vector<10x32xf32>
    %c0_21 = arith.constant 0 : index
    %c0_22 = arith.constant 0 : index
    %c0_23 = arith.constant 0 : index
    %40 = vector.load %arg8[%c0_21, %c0_22, %c0_23] : memref<2x32x96xf32, #tpu.memory_space<vmem>>, vector<1x32x96xf32>
    %41 = vector.shape_cast %40 : vector<1x32x96xf32> to vector<32x96xf32>
    %cst_24 = arith.constant dense<0.000000e+00> : vector<10x96xf32>
    %42 = tpu.matmul %39, %41, %cst_24 {dimension_numbers = #tpu.dot_dimension_numbers<[1], [0], [0], [1], [0, 0, 1, 1], [], []>} : vector<10x32xf32>, vector<32x96xf32>, vector<10x96xf32> -> vector<10x96xf32>
    %c0_25 = arith.constant 0 : index
    %c0_26 = arith.constant 0 : index
    %c0_27 = arith.constant 0 : index
    %43 = vector.load %arg9[%c0_25, %c0_26, %c0_27] : memref<2x1x96xf32, #tpu.memory_space<vmem>>, vector<1x1x96xf32>
    %44 = vector.shape_cast %43 : vector<1x1x96xf32> to vector<1x96xf32>
    %45 = vector.broadcast %44 : vector<1x96xf32> to vector<10x96xf32>
    %46 = arith.addf %42, %45 : vector<10x96xf32>
    %47 = vector.extract_strided_slice %46 {offsets = [0, 0], sizes = [5, 96], strides = [1, 1]} : vector<10x96xf32> to vector<5x96xf32>
    %48 = vector.extract_strided_slice %47 {offsets = [0, 0], sizes = [5, 16], strides = [1, 1]} : vector<5x96xf32> to vector<5x16xf32>
    %49 = vector.extract_strided_slice %47 {offsets = [0, 32], sizes = [5, 16], strides = [1, 1]} : vector<5x96xf32> to vector<5x16xf32>
    %50 = vector.extract_strided_slice %47 {offsets = [0, 64], sizes = [5, 16], strides = [1, 1]} : vector<5x96xf32> to vector<5x16xf32>
    %cst_28 = arith.constant dense<0.000000e+00> : vector<5x5xf32>
    %51 = tpu.matmul %48, %49, %cst_28 {dimension_numbers = #tpu.dot_dimension_numbers<[1], [1], [0], [0], [0, 0, 1, 0], [], []>} : vector<5x16xf32>, vector<5x16xf32>, vector<5x5xf32> -> vector<5x5xf32>
    %cst_29 = arith.constant 2.500000e-01 : f32
    %52 = vector.broadcast %cst_29 : f32 to vector<5x5xf32>
    %53 = arith.mulf %51, %52 : vector<5x5xf32>
    %cst_30 = arith.constant dense<0xFF800000> : vector<5xf32>
    %54 = vector.multi_reduction <maximumf>, %53, %cst_30 [1] : vector<5x5xf32> to vector<5xf32>
    %55 = vector.shape_cast %54 : vector<5xf32> to vector<5x1xf32>
    %56 = vector.broadcast %55 : vector<5x1xf32> to vector<5x5xf32>
    %57 = arith.subf %53, %56 : vector<5x5xf32>
    %58 = math.exp %57 : vector<5x5xf32>
    %cst_31 = arith.constant dense<0.000000e+00> : vector<5xf32>
    %59 = vector.multi_reduction <add>, %58, %cst_31 [1] : vector<5x5xf32> to vector<5xf32>
    %60 = vector.shape_cast %59 : vector<5xf32> to vector<5x1xf32>
    %61 = tpu.reciprocal %60 {approx = true} : vector<5x1xf32> -> vector<5x1xf32>
    %62 = vector.broadcast %61 : vector<5x1xf32> to vector<5x5xf32>
    %63 = arith.mulf %58, %62 : vector<5x5xf32>
    %cst_32 = arith.constant dense<0.000000e+00> : vector<5x16xf32>
    %64 = tpu.matmul %63, %50, %cst_32 {dimension_numbers = #tpu.dot_dimension_numbers<[1], [0], [0], [1], [0, 0, 1, 1], [], []>} : vector<5x5xf32>, vector<5x16xf32>, vector<5x16xf32> -> vector<5x16xf32>
    %65 = vector.extract_strided_slice %47 {offsets = [0, 16], sizes = [5, 16], strides = [1, 1]} : vector<5x96xf32> to vector<5x16xf32>
    %66 = vector.extract_strided_slice %47 {offsets = [0, 48], sizes = [5, 16], strides = [1, 1]} : vector<5x96xf32> to vector<5x16xf32>
    %67 = vector.extract_strided_slice %47 {offsets = [0, 80], sizes = [5, 16], strides = [1, 1]} : vector<5x96xf32> to vector<5x16xf32>
    %cst_33 = arith.constant dense<0.000000e+00> : vector<5x5xf32>
    %68 = tpu.matmul %65, %66, %cst_33 {dimension_numbers = #tpu.dot_dimension_numbers<[1], [1], [0], [0], [0, 0, 1, 0], [], []>} : vector<5x16xf32>, vector<5x16xf32>, vector<5x5xf32> -> vector<5x5xf32>
    %cst_34 = arith.constant 2.500000e-01 : f32
    %69 = vector.broadcast %cst_34 : f32 to vector<5x5xf32>
    %70 = arith.mulf %68, %69 : vector<5x5xf32>
    %cst_35 = arith.constant dense<0xFF800000> : vector<5xf32>
    %71 = vector.multi_reduction <maximumf>, %70, %cst_35 [1] : vector<5x5xf32> to vector<5xf32>
    %72 = vector.shape_cast %71 : vector<5xf32> to vector<5x1xf32>
    %73 = vector.broadcast %72 : vector<5x1xf32> to vector<5x5xf32>
    %74 = arith.subf %70, %73 : vector<5x5xf32>
    %75 = math.exp %74 : vector<5x5xf32>
    %cst_36 = arith.constant dense<0.000000e+00> : vector<5xf32>
    %76 = vector.multi_reduction <add>, %75, %cst_36 [1] : vector<5x5xf32> to vector<5xf32>
    %77 = vector.shape_cast %76 : vector<5xf32> to vector<5x1xf32>
    %78 = tpu.reciprocal %77 {approx = true} : vector<5x1xf32> -> vector<5x1xf32>
    %79 = vector.broadcast %78 : vector<5x1xf32> to vector<5x5xf32>
    %80 = arith.mulf %75, %79 : vector<5x5xf32>
    %cst_37 = arith.constant dense<0.000000e+00> : vector<5x16xf32>
    %81 = tpu.matmul %80, %67, %cst_37 {dimension_numbers = #tpu.dot_dimension_numbers<[1], [0], [0], [1], [0, 0, 1, 1], [], []>} : vector<5x5xf32>, vector<5x16xf32>, vector<5x16xf32> -> vector<5x16xf32>
    %82 = tpu.concatenate %64, %81 in 1 : vector<5x16xf32>, vector<5x16xf32> -> vector<5x32xf32>
    %83 = vector.extract_strided_slice %46 {offsets = [5, 0], sizes = [5, 96], strides = [1, 1]} : vector<10x96xf32> to vector<5x96xf32>
    %84 = vector.extract_strided_slice %83 {offsets = [0, 0], sizes = [5, 16], strides = [1, 1]} : vector<5x96xf32> to vector<5x16xf32>
    %85 = vector.extract_strided_slice %83 {offsets = [0, 32], sizes = [5, 16], strides = [1, 1]} : vector<5x96xf32> to vector<5x16xf32>
    %86 = vector.extract_strided_slice %83 {offsets = [0, 64], sizes = [5, 16], strides = [1, 1]} : vector<5x96xf32> to vector<5x16xf32>
    %cst_38 = arith.constant dense<0.000000e+00> : vector<5x5xf32>
    %87 = tpu.matmul %84, %85, %cst_38 {dimension_numbers = #tpu.dot_dimension_numbers<[1], [1], [0], [0], [0, 0, 1, 0], [], []>} : vector<5x16xf32>, vector<5x16xf32>, vector<5x5xf32> -> vector<5x5xf32>
    %cst_39 = arith.constant 2.500000e-01 : f32
    %88 = vector.broadcast %cst_39 : f32 to vector<5x5xf32>
    %89 = arith.mulf %87, %88 : vector<5x5xf32>
    %cst_40 = arith.constant dense<0xFF800000> : vector<5xf32>
    %90 = vector.multi_reduction <maximumf>, %89, %cst_40 [1] : vector<5x5xf32> to vector<5xf32>
    %91 = vector.shape_cast %90 : vector<5xf32> to vector<5x1xf32>
    %92 = vector.broadcast %91 : vector<5x1xf32> to vector<5x5xf32>
    %93 = arith.subf %89, %92 : vector<5x5xf32>
    %94 = math.exp %93 : vector<5x5xf32>
    %cst_41 = arith.constant dense<0.000000e+00> : vector<5xf32>
    %95 = vector.multi_reduction <add>, %94, %cst_41 [1] : vector<5x5xf32> to vector<5xf32>
    %96 = vector.shape_cast %95 : vector<5xf32> to vector<5x1xf32>
    %97 = tpu.reciprocal %96 {approx = true} : vector<5x1xf32> -> vector<5x1xf32>
    %98 = vector.broadcast %97 : vector<5x1xf32> to vector<5x5xf32>
    %99 = arith.mulf %94, %98 : vector<5x5xf32>
    %cst_42 = arith.constant dense<0.000000e+00> : vector<5x16xf32>
    %100 = tpu.matmul %99, %86, %cst_42 {dimension_numbers = #tpu.dot_dimension_numbers<[1], [0], [0], [1], [0, 0, 1, 1], [], []>} : vector<5x5xf32>, vector<5x16xf32>, vector<5x16xf32> -> vector<5x16xf32>
    %101 = vector.extract_strided_slice %83 {offsets = [0, 16], sizes = [5, 16], strides = [1, 1]} : vector<5x96xf32> to vector<5x16xf32>
    %102 = vector.extract_strided_slice %83 {offsets = [0, 48], sizes = [5, 16], strides = [1, 1]} : vector<5x96xf32> to vector<5x16xf32>
    %103 = vector.extract_strided_slice %83 {offsets = [0, 80], sizes = [5, 16], strides = [1, 1]} : vector<5x96xf32> to vector<5x16xf32>
    %cst_43 = arith.constant dense<0.000000e+00> : vector<5x5xf32>
    %104 = tpu.matmul %101, %102, %cst_43 {dimension_numbers = #tpu.dot_dimension_numbers<[1], [1], [0], [0], [0, 0, 1, 0], [], []>} : vector<5x16xf32>, vector<5x16xf32>, vector<5x5xf32> -> vector<5x5xf32>
    %cst_44 = arith.constant 2.500000e-01 : f32
    %105 = vector.broadcast %cst_44 : f32 to vector<5x5xf32>
    %106 = arith.mulf %104, %105 : vector<5x5xf32>
    %cst_45 = arith.constant dense<0xFF800000> : vector<5xf32>
    %107 = vector.multi_reduction <maximumf>, %106, %cst_45 [1] : vector<5x5xf32> to vector<5xf32>
    %108 = vector.shape_cast %107 : vector<5xf32> to vector<5x1xf32>
    %109 = vector.broadcast %108 : vector<5x1xf32> to vector<5x5xf32>
    %110 = arith.subf %106, %109 : vector<5x5xf32>
    %111 = math.exp %110 : vector<5x5xf32>
    %cst_46 = arith.constant dense<0.000000e+00> : vector<5xf32>
    %112 = vector.multi_reduction <add>, %111, %cst_46 [1] : vector<5x5xf32> to vector<5xf32>
    %113 = vector.shape_cast %112 : vector<5xf32> to vector<5x1xf32>
    %114 = tpu.reciprocal %113 {approx = true} : vector<5x1xf32> -> vector<5x1xf32>
    %115 = vector.broadcast %114 : vector<5x1xf32> to vector<5x5xf32>
    %116 = arith.mulf %111, %115 : vector<5x5xf32>
    %cst_47 = arith.constant dense<0.000000e+00> : vector<5x16xf32>
    %117 = tpu.matmul %116, %103, %cst_47 {dimension_numbers = #tpu.dot_dimension_numbers<[1], [0], [0], [1], [0, 0, 1, 1], [], []>} : vector<5x5xf32>, vector<5x16xf32>, vector<5x16xf32> -> vector<5x16xf32>
    %118 = tpu.concatenate %100, %117 in 1 : vector<5x16xf32>, vector<5x16xf32> -> vector<5x32xf32>
    %119 = tpu.concatenate %82, %118 in 0 : vector<5x32xf32>, vector<5x32xf32> -> vector<10x32xf32>
    %c0_48 = arith.constant 0 : index
    %c0_49 = arith.constant 0 : index
    %c0_50 = arith.constant 0 : index
    %120 = vector.load %arg10[%c0_48, %c0_49, %c0_50] : memref<2x32x32xf32, #tpu.memory_space<vmem>>, vector<1x32x32xf32>
    %121 = vector.shape_cast %120 : vector<1x32x32xf32> to vector<32x32xf32>
    %cst_51 = arith.constant dense<0.000000e+00> : vector<10x32xf32>
    %122 = tpu.matmul %119, %121, %cst_51 {dimension_numbers = #tpu.dot_dimension_numbers<[1], [0], [0], [1], [0, 0, 1, 1], [], []>} : vector<10x32xf32>, vector<32x32xf32>, vector<10x32xf32> -> vector<10x32xf32>
    %123 = arith.addf %11, %122 : vector<10x32xf32>
    %c0_52 = arith.constant 0 : index
    %c0_53 = arith.constant 0 : index
    %c0_54 = arith.constant 0 : index
    %124 = vector.load %arg11[%c0_52, %c0_53, %c0_54] : memref<2x1x32xf32, #tpu.memory_space<vmem>>, vector<1x1x32xf32>
    %125 = vector.shape_cast %124 : vector<1x1x32xf32> to vector<1x32xf32>
    %126 = vector.broadcast %125 : vector<1x32xf32> to vector<10x32xf32>
    %127 = arith.addf %123, %126 : vector<10x32xf32>
    %c0_55 = arith.constant 0 : index
    %c0_56 = arith.constant 0 : index
    %c0_57 = arith.constant 0 : index
    %128 = vector.load %arg12[%c0_55, %c0_56, %c0_57] : memref<2x1x32xf32, #tpu.memory_space<vmem>>, vector<1x1x32xf32>
    %129 = vector.shape_cast %128 : vector<1x1x32xf32> to vector<1x32xf32>
    %c0_58 = arith.constant 0 : index
    %c0_59 = arith.constant 0 : index
    %c0_60 = arith.constant 0 : index
    %130 = vector.load %arg13[%c0_58, %c0_59, %c0_60] : memref<2x1x32xf32, #tpu.memory_space<vmem>>, vector<1x1x32xf32>
    %131 = vector.shape_cast %130 : vector<1x1x32xf32> to vector<1x32xf32>
    %cst_61 = arith.constant dense<0.000000e+00> : vector<10xf32>
    %132 = vector.multi_reduction <add>, %127, %cst_61 [1] : vector<10x32xf32> to vector<10xf32>
    %133 = vector.shape_cast %132 : vector<10xf32> to vector<10x1xf32>
    %cst_62 = arith.constant 3.200000e+01 : f32
    %134 = vector.broadcast %cst_62 : f32 to vector<10x1xf32>
    %135 = arith.divf %133, %134 : vector<10x1xf32>
    %136 = arith.mulf %127, %127 : vector<10x32xf32>
    %cst_63 = arith.constant dense<0.000000e+00> : vector<10xf32>
    %137 = vector.multi_reduction <add>, %136, %cst_63 [1] : vector<10x32xf32> to vector<10xf32>
    %138 = vector.shape_cast %137 : vector<10xf32> to vector<10x1xf32>
    %cst_64 = arith.constant 3.200000e+01 : f32
    %139 = vector.broadcast %cst_64 : f32 to vector<10x1xf32>
    %140 = arith.divf %138, %139 : vector<10x1xf32>
    %141 = arith.mulf %135, %135 : vector<10x1xf32>
    %142 = arith.subf %140, %141 : vector<10x1xf32>
    %cst_65 = arith.constant 0.000000e+00 : f32
    %143 = vector.broadcast %cst_65 : f32 to vector<10x1xf32>
    %144 = arith.maximumf %142, %143 : vector<10x1xf32>
    %145 = vector.broadcast %135 : vector<10x1xf32> to vector<10x32xf32>
    %146 = arith.subf %127, %145 : vector<10x32xf32>
    %cst_66 = arith.constant 9.99999974E-6 : f32
    %147 = vector.broadcast %cst_66 : f32 to vector<10x1xf32>
    %148 = arith.addf %144, %147 : vector<10x1xf32>
    %149 = math.rsqrt %148 : vector<10x1xf32>
    %150 = vector.broadcast %149 : vector<10x1xf32> to vector<10x32xf32>
    %151 = arith.mulf %146, %150 : vector<10x32xf32>
    %152 = vector.broadcast %129 : vector<1x32xf32> to vector<10x32xf32>
    %153 = arith.mulf %151, %152 : vector<10x32xf32>
    %154 = vector.broadcast %131 : vector<1x32xf32> to vector<10x32xf32>
    %155 = arith.addf %153, %154 : vector<10x32xf32>
    %c0_67 = arith.constant 0 : index
    %c0_68 = arith.constant 0 : index
    %c0_69 = arith.constant 0 : index
    %156 = vector.load %arg14[%c0_67, %c0_68, %c0_69] : memref<2x32x128xf32, #tpu.memory_space<vmem>>, vector<1x32x128xf32>
    %157 = vector.shape_cast %156 : vector<1x32x128xf32> to vector<32x128xf32>
    %cst_70 = arith.constant dense<0.000000e+00> : vector<10x128xf32>
    %158 = tpu.matmul %155, %157, %cst_70 {dimension_numbers = #tpu.dot_dimension_numbers<[1], [0], [0], [1], [0, 0, 1, 1], [], []>} : vector<10x32xf32>, vector<32x128xf32>, vector<10x128xf32> -> vector<10x128xf32>
    %c0_71 = arith.constant 0 : index
    %c0_72 = arith.constant 0 : index
    %c0_73 = arith.constant 0 : index
    %159 = vector.load %arg15[%c0_71, %c0_72, %c0_73] : memref<2x1x128xf32, #tpu.memory_space<vmem>>, vector<1x1x128xf32>
    %160 = vector.shape_cast %159 : vector<1x1x128xf32> to vector<1x128xf32>
    %161 = vector.broadcast %160 : vector<1x128xf32> to vector<10x128xf32>
    %162 = arith.addf %158, %161 : vector<10x128xf32>
    %163 = arith.mulf %162, %162 : vector<10x128xf32>
    %164 = arith.mulf %162, %163 : vector<10x128xf32>
    %cst_74 = arith.constant 4.471500e-02 : f32
    %165 = vector.broadcast %cst_74 : f32 to vector<10x128xf32>
    %166 = arith.mulf %165, %164 : vector<10x128xf32>
    %167 = arith.addf %162, %166 : vector<10x128xf32>
    %cst_75 = arith.constant 0.797884583 : f32
    %168 = vector.broadcast %cst_75 : f32 to vector<10x128xf32>
    %169 = arith.mulf %168, %167 : vector<10x128xf32>
    %170 = math.tanh %169 : vector<10x128xf32>
    %cst_76 = arith.constant 1.000000e+00 : f32
    %171 = vector.broadcast %cst_76 : f32 to vector<10x128xf32>
    %172 = arith.addf %171, %170 : vector<10x128xf32>
    %cst_77 = arith.constant 5.000000e-01 : f32
    %173 = vector.broadcast %cst_77 : f32 to vector<10x128xf32>
    %174 = arith.mulf %173, %172 : vector<10x128xf32>
    %175 = arith.mulf %162, %174 : vector<10x128xf32>
    %c0_78 = arith.constant 0 : index
    %c0_79 = arith.constant 0 : index
    %c0_80 = arith.constant 0 : index
    %176 = vector.load %arg16[%c0_78, %c0_79, %c0_80] : memref<2x128x32xf32, #tpu.memory_space<vmem>>, vector<1x128x32xf32>
    %177 = vector.shape_cast %176 : vector<1x128x32xf32> to vector<128x32xf32>
    %cst_81 = arith.constant dense<0.000000e+00> : vector<10x32xf32>
    %178 = tpu.matmul %175, %177, %cst_81 {dimension_numbers = #tpu.dot_dimension_numbers<[1], [0], [0], [1], [0, 0, 1, 1], [], []>} : vector<10x128xf32>, vector<128x32xf32>, vector<10x32xf32> -> vector<10x32xf32>
    %179 = arith.addf %127, %178 : vector<10x32xf32>
    %c0_82 = arith.constant 0 : index
    %c0_83 = arith.constant 0 : index
    %c0_84 = arith.constant 0 : index
    %180 = vector.load %arg17[%c0_82, %c0_83, %c0_84] : memref<2x1x32xf32, #tpu.memory_space<vmem>>, vector<1x1x32xf32>
    %181 = vector.shape_cast %180 : vector<1x1x32xf32> to vector<1x32xf32>
    %182 = vector.broadcast %181 : vector<1x32xf32> to vector<10x32xf32>
    %183 = arith.addf %179, %182 : vector<10x32xf32>
    %c1 = arith.constant 1 : index
    %c0_85 = arith.constant 0 : index
    %c0_86 = arith.constant 0 : index
    %184 = vector.load %arg6[%c1, %c0_85, %c0_86] : memref<2x1x32xf32, #tpu.memory_space<vmem>>, vector<1x1x32xf32>
    %185 = vector.shape_cast %184 : vector<1x1x32xf32> to vector<1x32xf32>
    %c1_87 = arith.constant 1 : index
    %c0_88 = arith.constant 0 : index
    %c0_89 = arith.constant 0 : index
    %186 = vector.load %arg7[%c1_87, %c0_88, %c0_89] : memref<2x1x32xf32, #tpu.memory_space<vmem>>, vector<1x1x32xf32>
    %187 = vector.shape_cast %186 : vector<1x1x32xf32> to vector<1x32xf32>
    %cst_90 = arith.constant dense<0.000000e+00> : vector<10xf32>
    %188 = vector.multi_reduction <add>, %183, %cst_90 [1] : vector<10x32xf32> to vector<10xf32>
    %189 = vector.shape_cast %188 : vector<10xf32> to vector<10x1xf32>
    %cst_91 = arith.constant 3.200000e+01 : f32
    %190 = vector.broadcast %cst_91 : f32 to vector<10x1xf32>
    %191 = arith.divf %189, %190 : vector<10x1xf32>
    %192 = arith.mulf %183, %183 : vector<10x32xf32>
    %cst_92 = arith.constant dense<0.000000e+00> : vector<10xf32>
    %193 = vector.multi_reduction <add>, %192, %cst_92 [1] : vector<10x32xf32> to vector<10xf32>
    %194 = vector.shape_cast %193 : vector<10xf32> to vector<10x1xf32>
    %cst_93 = arith.constant 3.200000e+01 : f32
    %195 = vector.broadcast %cst_93 : f32 to vector<10x1xf32>
    %196 = arith.divf %194, %195 : vector<10x1xf32>
    %197 = arith.mulf %191, %191 : vector<10x1xf32>
    %198 = arith.subf %196, %197 : vector<10x1xf32>
    %cst_94 = arith.constant 0.000000e+00 : f32
    %199 = vector.broadcast %cst_94 : f32 to vector<10x1xf32>
    %200 = arith.maximumf %198, %199 : vector<10x1xf32>
    %201 = vector.broadcast %191 : vector<10x1xf32> to vector<10x32xf32>
    %202 = arith.subf %183, %201 : vector<10x32xf32>
    %cst_95 = arith.constant 9.99999974E-6 : f32
    %203 = vector.broadcast %cst_95 : f32 to vector<10x1xf32>
    %204 = arith.addf %200, %203 : vector<10x1xf32>
    %205 = math.rsqrt %204 : vector<10x1xf32>
    %206 = vector.broadcast %205 : vector<10x1xf32> to vector<10x32xf32>
    %207 = arith.mulf %202, %206 : vector<10x32xf32>
    %208 = vector.broadcast %185 : vector<1x32xf32> to vector<10x32xf32>
    %209 = arith.mulf %207, %208 : vector<10x32xf32>
    %210 = vector.broadcast %187 : vector<1x32xf32> to vector<10x32xf32>
    %211 = arith.addf %209, %210 : vector<10x32xf32>
    %c1_96 = arith.constant 1 : index
    %c0_97 = arith.constant 0 : index
    %c0_98 = arith.constant 0 : index
    %212 = vector.load %arg8[%c1_96, %c0_97, %c0_98] : memref<2x32x96xf32, #tpu.memory_space<vmem>>, vector<1x32x96xf32>
    %213 = vector.shape_cast %212 : vector<1x32x96xf32> to vector<32x96xf32>
    %cst_99 = arith.constant dense<0.000000e+00> : vector<10x96xf32>
    %214 = tpu.matmul %211, %213, %cst_99 {dimension_numbers = #tpu.dot_dimension_numbers<[1], [0], [0], [1], [0, 0, 1, 1], [], []>} : vector<10x32xf32>, vector<32x96xf32>, vector<10x96xf32> -> vector<10x96xf32>
    %c1_100 = arith.constant 1 : index
    %c0_101 = arith.constant 0 : index
    %c0_102 = arith.constant 0 : index
    %215 = vector.load %arg9[%c1_100, %c0_101, %c0_102] : memref<2x1x96xf32, #tpu.memory_space<vmem>>, vector<1x1x96xf32>
    %216 = vector.shape_cast %215 : vector<1x1x96xf32> to vector<1x96xf32>
    %217 = vector.broadcast %216 : vector<1x96xf32> to vector<10x96xf32>
    %218 = arith.addf %214, %217 : vector<10x96xf32>
    %219 = vector.extract_strided_slice %218 {offsets = [0, 0], sizes = [5, 96], strides = [1, 1]} : vector<10x96xf32> to vector<5x96xf32>
    %220 = vector.extract_strided_slice %219 {offsets = [0, 0], sizes = [5, 16], strides = [1, 1]} : vector<5x96xf32> to vector<5x16xf32>
    %221 = vector.extract_strided_slice %219 {offsets = [0, 32], sizes = [5, 16], strides = [1, 1]} : vector<5x96xf32> to vector<5x16xf32>
    %222 = vector.extract_strided_slice %219 {offsets = [0, 64], sizes = [5, 16], strides = [1, 1]} : vector<5x96xf32> to vector<5x16xf32>
    %cst_103 = arith.constant dense<0.000000e+00> : vector<5x5xf32>
    %223 = tpu.matmul %220, %221, %cst_103 {dimension_numbers = #tpu.dot_dimension_numbers<[1], [1], [0], [0], [0, 0, 1, 0], [], []>} : vector<5x16xf32>, vector<5x16xf32>, vector<5x5xf32> -> vector<5x5xf32>
    %cst_104 = arith.constant 2.500000e-01 : f32
    %224 = vector.broadcast %cst_104 : f32 to vector<5x5xf32>
    %225 = arith.mulf %223, %224 : vector<5x5xf32>
    %cst_105 = arith.constant dense<0xFF800000> : vector<5xf32>
    %226 = vector.multi_reduction <maximumf>, %225, %cst_105 [1] : vector<5x5xf32> to vector<5xf32>
    %227 = vector.shape_cast %226 : vector<5xf32> to vector<5x1xf32>
    %228 = vector.broadcast %227 : vector<5x1xf32> to vector<5x5xf32>
    %229 = arith.subf %225, %228 : vector<5x5xf32>
    %230 = math.exp %229 : vector<5x5xf32>
    %cst_106 = arith.constant dense<0.000000e+00> : vector<5xf32>
    %231 = vector.multi_reduction <add>, %230, %cst_106 [1] : vector<5x5xf32> to vector<5xf32>
    %232 = vector.shape_cast %231 : vector<5xf32> to vector<5x1xf32>
    %233 = tpu.reciprocal %232 {approx = true} : vector<5x1xf32> -> vector<5x1xf32>
    %234 = vector.broadcast %233 : vector<5x1xf32> to vector<5x5xf32>
    %235 = arith.mulf %230, %234 : vector<5x5xf32>
    %cst_107 = arith.constant dense<0.000000e+00> : vector<5x16xf32>
    %236 = tpu.matmul %235, %222, %cst_107 {dimension_numbers = #tpu.dot_dimension_numbers<[1], [0], [0], [1], [0, 0, 1, 1], [], []>} : vector<5x5xf32>, vector<5x16xf32>, vector<5x16xf32> -> vector<5x16xf32>
    %237 = vector.extract_strided_slice %219 {offsets = [0, 16], sizes = [5, 16], strides = [1, 1]} : vector<5x96xf32> to vector<5x16xf32>
    %238 = vector.extract_strided_slice %219 {offsets = [0, 48], sizes = [5, 16], strides = [1, 1]} : vector<5x96xf32> to vector<5x16xf32>
    %239 = vector.extract_strided_slice %219 {offsets = [0, 80], sizes = [5, 16], strides = [1, 1]} : vector<5x96xf32> to vector<5x16xf32>
    %cst_108 = arith.constant dense<0.000000e+00> : vector<5x5xf32>
    %240 = tpu.matmul %237, %238, %cst_108 {dimension_numbers = #tpu.dot_dimension_numbers<[1], [1], [0], [0], [0, 0, 1, 0], [], []>} : vector<5x16xf32>, vector<5x16xf32>, vector<5x5xf32> -> vector<5x5xf32>
    %cst_109 = arith.constant 2.500000e-01 : f32
    %241 = vector.broadcast %cst_109 : f32 to vector<5x5xf32>
    %242 = arith.mulf %240, %241 : vector<5x5xf32>
    %cst_110 = arith.constant dense<0xFF800000> : vector<5xf32>
    %243 = vector.multi_reduction <maximumf>, %242, %cst_110 [1] : vector<5x5xf32> to vector<5xf32>
    %244 = vector.shape_cast %243 : vector<5xf32> to vector<5x1xf32>
    %245 = vector.broadcast %244 : vector<5x1xf32> to vector<5x5xf32>
    %246 = arith.subf %242, %245 : vector<5x5xf32>
    %247 = math.exp %246 : vector<5x5xf32>
    %cst_111 = arith.constant dense<0.000000e+00> : vector<5xf32>
    %248 = vector.multi_reduction <add>, %247, %cst_111 [1] : vector<5x5xf32> to vector<5xf32>
    %249 = vector.shape_cast %248 : vector<5xf32> to vector<5x1xf32>
    %250 = tpu.reciprocal %249 {approx = true} : vector<5x1xf32> -> vector<5x1xf32>
    %251 = vector.broadcast %250 : vector<5x1xf32> to vector<5x5xf32>
    %252 = arith.mulf %247, %251 : vector<5x5xf32>
    %cst_112 = arith.constant dense<0.000000e+00> : vector<5x16xf32>
    %253 = tpu.matmul %252, %239, %cst_112 {dimension_numbers = #tpu.dot_dimension_numbers<[1], [0], [0], [1], [0, 0, 1, 1], [], []>} : vector<5x5xf32>, vector<5x16xf32>, vector<5x16xf32> -> vector<5x16xf32>
    %254 = tpu.concatenate %236, %253 in 1 : vector<5x16xf32>, vector<5x16xf32> -> vector<5x32xf32>
    %255 = vector.extract_strided_slice %218 {offsets = [5, 0], sizes = [5, 96], strides = [1, 1]} : vector<10x96xf32> to vector<5x96xf32>
    %256 = vector.extract_strided_slice %255 {offsets = [0, 0], sizes = [5, 16], strides = [1, 1]} : vector<5x96xf32> to vector<5x16xf32>
    %257 = vector.extract_strided_slice %255 {offsets = [0, 32], sizes = [5, 16], strides = [1, 1]} : vector<5x96xf32> to vector<5x16xf32>
    %258 = vector.extract_strided_slice %255 {offsets = [0, 64], sizes = [5, 16], strides = [1, 1]} : vector<5x96xf32> to vector<5x16xf32>
    %cst_113 = arith.constant dense<0.000000e+00> : vector<5x5xf32>
    %259 = tpu.matmul %256, %257, %cst_113 {dimension_numbers = #tpu.dot_dimension_numbers<[1], [1], [0], [0], [0, 0, 1, 0], [], []>} : vector<5x16xf32>, vector<5x16xf32>, vector<5x5xf32> -> vector<5x5xf32>
    %cst_114 = arith.constant 2.500000e-01 : f32
    %260 = vector.broadcast %cst_114 : f32 to vector<5x5xf32>
    %261 = arith.mulf %259, %260 : vector<5x5xf32>
    %cst_115 = arith.constant dense<0xFF800000> : vector<5xf32>
    %262 = vector.multi_reduction <maximumf>, %261, %cst_115 [1] : vector<5x5xf32> to vector<5xf32>
    %263 = vector.shape_cast %262 : vector<5xf32> to vector<5x1xf32>
    %264 = vector.broadcast %263 : vector<5x1xf32> to vector<5x5xf32>
    %265 = arith.subf %261, %264 : vector<5x5xf32>
    %266 = math.exp %265 : vector<5x5xf32>
    %cst_116 = arith.constant dense<0.000000e+00> : vector<5xf32>
    %267 = vector.multi_reduction <add>, %266, %cst_116 [1] : vector<5x5xf32> to vector<5xf32>
    %268 = vector.shape_cast %267 : vector<5xf32> to vector<5x1xf32>
    %269 = tpu.reciprocal %268 {approx = true} : vector<5x1xf32> -> vector<5x1xf32>
    %270 = vector.broadcast %269 : vector<5x1xf32> to vector<5x5xf32>
    %271 = arith.mulf %266, %270 : vector<5x5xf32>
    %cst_117 = arith.constant dense<0.000000e+00> : vector<5x16xf32>
    %272 = tpu.matmul %271, %258, %cst_117 {dimension_numbers = #tpu.dot_dimension_numbers<[1], [0], [0], [1], [0, 0, 1, 1], [], []>} : vector<5x5xf32>, vector<5x16xf32>, vector<5x16xf32> -> vector<5x16xf32>
    %273 = vector.extract_strided_slice %255 {offsets = [0, 16], sizes = [5, 16], strides = [1, 1]} : vector<5x96xf32> to vector<5x16xf32>
    %274 = vector.extract_strided_slice %255 {offsets = [0, 48], sizes = [5, 16], strides = [1, 1]} : vector<5x96xf32> to vector<5x16xf32>
    %275 = vector.extract_strided_slice %255 {offsets = [0, 80], sizes = [5, 16], strides = [1, 1]} : vector<5x96xf32> to vector<5x16xf32>
    %cst_118 = arith.constant dense<0.000000e+00> : vector<5x5xf32>
    %276 = tpu.matmul %273, %274, %cst_118 {dimension_numbers = #tpu.dot_dimension_numbers<[1], [1], [0], [0], [0, 0, 1, 0], [], []>} : vector<5x16xf32>, vector<5x16xf32>, vector<5x5xf32> -> vector<5x5xf32>
    %cst_119 = arith.constant 2.500000e-01 : f32
    %277 = vector.broadcast %cst_119 : f32 to vector<5x5xf32>
    %278 = arith.mulf %276, %277 : vector<5x5xf32>
    %cst_120 = arith.constant dense<0xFF800000> : vector<5xf32>
    %279 = vector.multi_reduction <maximumf>, %278, %cst_120 [1] : vector<5x5xf32> to vector<5xf32>
    %280 = vector.shape_cast %279 : vector<5xf32> to vector<5x1xf32>
    %281 = vector.broadcast %280 : vector<5x1xf32> to vector<5x5xf32>
    %282 = arith.subf %278, %281 : vector<5x5xf32>
    %283 = math.exp %282 : vector<5x5xf32>
    %cst_121 = arith.constant dense<0.000000e+00> : vector<5xf32>
    %284 = vector.multi_reduction <add>, %283, %cst_121 [1] : vector<5x5xf32> to vector<5xf32>
    %285 = vector.shape_cast %284 : vector<5xf32> to vector<5x1xf32>
    %286 = tpu.reciprocal %285 {approx = true} : vector<5x1xf32> -> vector<5x1xf32>
    %287 = vector.broadcast %286 : vector<5x1xf32> to vector<5x5xf32>
    %288 = arith.mulf %283, %287 : vector<5x5xf32>
    %cst_122 = arith.constant dense<0.000000e+00> : vector<5x16xf32>
    %289 = tpu.matmul %288, %275, %cst_122 {dimension_numbers = #tpu.dot_dimension_numbers<[1], [0], [0], [1], [0, 0, 1, 1], [], []>} : vector<5x5xf32>, vector<5x16xf32>, vector<5x16xf32> -> vector<5x16xf32>
    %290 = tpu.concatenate %272, %289 in 1 : vector<5x16xf32>, vector<5x16xf32> -> vector<5x32xf32>
    %291 = tpu.concatenate %254, %290 in 0 : vector<5x32xf32>, vector<5x32xf32> -> vector<10x32xf32>
    %c1_123 = arith.constant 1 : index
    %c0_124 = arith.constant 0 : index
    %c0_125 = arith.constant 0 : index
    %292 = vector.load %arg10[%c1_123, %c0_124, %c0_125] : memref<2x32x32xf32, #tpu.memory_space<vmem>>, vector<1x32x32xf32>
    %293 = vector.shape_cast %292 : vector<1x32x32xf32> to vector<32x32xf32>
    %cst_126 = arith.constant dense<0.000000e+00> : vector<10x32xf32>
    %294 = tpu.matmul %291, %293, %cst_126 {dimension_numbers = #tpu.dot_dimension_numbers<[1], [0], [0], [1], [0, 0, 1, 1], [], []>} : vector<10x32xf32>, vector<32x32xf32>, vector<10x32xf32> -> vector<10x32xf32>
    %295 = arith.addf %183, %294 : vector<10x32xf32>
    %c1_127 = arith.constant 1 : index
    %c0_128 = arith.constant 0 : index
    %c0_129 = arith.constant 0 : index
    %296 = vector.load %arg11[%c1_127, %c0_128, %c0_129] : memref<2x1x32xf32, #tpu.memory_space<vmem>>, vector<1x1x32xf32>
    %297 = vector.shape_cast %296 : vector<1x1x32xf32> to vector<1x32xf32>
    %298 = vector.broadcast %297 : vector<1x32xf32> to vector<10x32xf32>
    %299 = arith.addf %295, %298 : vector<10x32xf32>
    %c1_130 = arith.constant 1 : index
    %c0_131 = arith.constant 0 : index
    %c0_132 = arith.constant 0 : index
    %300 = vector.load %arg12[%c1_130, %c0_131, %c0_132] : memref<2x1x32xf32, #tpu.memory_space<vmem>>, vector<1x1x32xf32>
    %301 = vector.shape_cast %300 : vector<1x1x32xf32> to vector<1x32xf32>
    %c1_133 = arith.constant 1 : index
    %c0_134 = arith.constant 0 : index
    %c0_135 = arith.constant 0 : index
    %302 = vector.load %arg13[%c1_133, %c0_134, %c0_135] : memref<2x1x32xf32, #tpu.memory_space<vmem>>, vector<1x1x32xf32>
    %303 = vector.shape_cast %302 : vector<1x1x32xf32> to vector<1x32xf32>
    %cst_136 = arith.constant dense<0.000000e+00> : vector<10xf32>
    %304 = vector.multi_reduction <add>, %299, %cst_136 [1] : vector<10x32xf32> to vector<10xf32>
    %305 = vector.shape_cast %304 : vector<10xf32> to vector<10x1xf32>
    %cst_137 = arith.constant 3.200000e+01 : f32
    %306 = vector.broadcast %cst_137 : f32 to vector<10x1xf32>
    %307 = arith.divf %305, %306 : vector<10x1xf32>
    %308 = arith.mulf %299, %299 : vector<10x32xf32>
    %cst_138 = arith.constant dense<0.000000e+00> : vector<10xf32>
    %309 = vector.multi_reduction <add>, %308, %cst_138 [1] : vector<10x32xf32> to vector<10xf32>
    %310 = vector.shape_cast %309 : vector<10xf32> to vector<10x1xf32>
    %cst_139 = arith.constant 3.200000e+01 : f32
    %311 = vector.broadcast %cst_139 : f32 to vector<10x1xf32>
    %312 = arith.divf %310, %311 : vector<10x1xf32>
    %313 = arith.mulf %307, %307 : vector<10x1xf32>
    %314 = arith.subf %312, %313 : vector<10x1xf32>
    %cst_140 = arith.constant 0.000000e+00 : f32
    %315 = vector.broadcast %cst_140 : f32 to vector<10x1xf32>
    %316 = arith.maximumf %314, %315 : vector<10x1xf32>
    %317 = vector.broadcast %307 : vector<10x1xf32> to vector<10x32xf32>
    %318 = arith.subf %299, %317 : vector<10x32xf32>
    %cst_141 = arith.constant 9.99999974E-6 : f32
    %319 = vector.broadcast %cst_141 : f32 to vector<10x1xf32>
    %320 = arith.addf %316, %319 : vector<10x1xf32>
    %321 = math.rsqrt %320 : vector<10x1xf32>
    %322 = vector.broadcast %321 : vector<10x1xf32> to vector<10x32xf32>
    %323 = arith.mulf %318, %322 : vector<10x32xf32>
    %324 = vector.broadcast %301 : vector<1x32xf32> to vector<10x32xf32>
    %325 = arith.mulf %323, %324 : vector<10x32xf32>
    %326 = vector.broadcast %303 : vector<1x32xf32> to vector<10x32xf32>
    %327 = arith.addf %325, %326 : vector<10x32xf32>
    %c1_142 = arith.constant 1 : index
    %c0_143 = arith.constant 0 : index
    %c0_144 = arith.constant 0 : index
    %328 = vector.load %arg14[%c1_142, %c0_143, %c0_144] : memref<2x32x128xf32, #tpu.memory_space<vmem>>, vector<1x32x128xf32>
    %329 = vector.shape_cast %328 : vector<1x32x128xf32> to vector<32x128xf32>
    %cst_145 = arith.constant dense<0.000000e+00> : vector<10x128xf32>
    %330 = tpu.matmul %327, %329, %cst_145 {dimension_numbers = #tpu.dot_dimension_numbers<[1], [0], [0], [1], [0, 0, 1, 1], [], []>} : vector<10x32xf32>, vector<32x128xf32>, vector<10x128xf32> -> vector<10x128xf32>
    %c1_146 = arith.constant 1 : index
    %c0_147 = arith.constant 0 : index
    %c0_148 = arith.constant 0 : index
    %331 = vector.load %arg15[%c1_146, %c0_147, %c0_148] : memref<2x1x128xf32, #tpu.memory_space<vmem>>, vector<1x1x128xf32>
    %332 = vector.shape_cast %331 : vector<1x1x128xf32> to vector<1x128xf32>
    %333 = vector.broadcast %332 : vector<1x128xf32> to vector<10x128xf32>
    %334 = arith.addf %330, %333 : vector<10x128xf32>
    %335 = arith.mulf %334, %334 : vector<10x128xf32>
    %336 = arith.mulf %334, %335 : vector<10x128xf32>
    %cst_149 = arith.constant 4.471500e-02 : f32
    %337 = vector.broadcast %cst_149 : f32 to vector<10x128xf32>
    %338 = arith.mulf %337, %336 : vector<10x128xf32>
    %339 = arith.addf %334, %338 : vector<10x128xf32>
    %cst_150 = arith.constant 0.797884583 : f32
    %340 = vector.broadcast %cst_150 : f32 to vector<10x128xf32>
    %341 = arith.mulf %340, %339 : vector<10x128xf32>
    %342 = math.tanh %341 : vector<10x128xf32>
    %cst_151 = arith.constant 1.000000e+00 : f32
    %343 = vector.broadcast %cst_151 : f32 to vector<10x128xf32>
    %344 = arith.addf %343, %342 : vector<10x128xf32>
    %cst_152 = arith.constant 5.000000e-01 : f32
    %345 = vector.broadcast %cst_152 : f32 to vector<10x128xf32>
    %346 = arith.mulf %345, %344 : vector<10x128xf32>
    %347 = arith.mulf %334, %346 : vector<10x128xf32>
    %c1_153 = arith.constant 1 : index
    %c0_154 = arith.constant 0 : index
    %c0_155 = arith.constant 0 : index
    %348 = vector.load %arg16[%c1_153, %c0_154, %c0_155] : memref<2x128x32xf32, #tpu.memory_space<vmem>>, vector<1x128x32xf32>
    %349 = vector.shape_cast %348 : vector<1x128x32xf32> to vector<128x32xf32>
    %cst_156 = arith.constant dense<0.000000e+00> : vector<10x32xf32>
    %350 = tpu.matmul %347, %349, %cst_156 {dimension_numbers = #tpu.dot_dimension_numbers<[1], [0], [0], [1], [0, 0, 1, 1], [], []>} : vector<10x128xf32>, vector<128x32xf32>, vector<10x32xf32> -> vector<10x32xf32>
    %351 = arith.addf %299, %350 : vector<10x32xf32>
    %c1_157 = arith.constant 1 : index
    %c0_158 = arith.constant 0 : index
    %c0_159 = arith.constant 0 : index
    %352 = vector.load %arg17[%c1_157, %c0_158, %c0_159] : memref<2x1x32xf32, #tpu.memory_space<vmem>>, vector<1x1x32xf32>
    %353 = vector.shape_cast %352 : vector<1x1x32xf32> to vector<1x32xf32>
    %354 = vector.broadcast %353 : vector<1x32xf32> to vector<10x32xf32>
    %355 = arith.addf %351, %354 : vector<10x32xf32>
    %c0_160 = arith.constant 0 : index
    %c0_161 = arith.constant 0 : index
    %356 = vector.load %arg18[%c0_160, %c0_161] : memref<1x32xf32, #tpu.memory_space<vmem>>, vector<1x32xf32>
    %c0_162 = arith.constant 0 : index
    %c0_163 = arith.constant 0 : index
    %357 = vector.load %arg19[%c0_162, %c0_163] : memref<1x32xf32, #tpu.memory_space<vmem>>, vector<1x32xf32>
    %cst_164 = arith.constant dense<0.000000e+00> : vector<10xf32>
    %358 = vector.multi_reduction <add>, %355, %cst_164 [1] : vector<10x32xf32> to vector<10xf32>
    %359 = vector.shape_cast %358 : vector<10xf32> to vector<10x1xf32>
    %cst_165 = arith.constant 3.200000e+01 : f32
    %360 = vector.broadcast %cst_165 : f32 to vector<10x1xf32>
    %361 = arith.divf %359, %360 : vector<10x1xf32>
    %362 = arith.mulf %355, %355 : vector<10x32xf32>
    %cst_166 = arith.constant dense<0.000000e+00> : vector<10xf32>
    %363 = vector.multi_reduction <add>, %362, %cst_166 [1] : vector<10x32xf32> to vector<10xf32>
    %364 = vector.shape_cast %363 : vector<10xf32> to vector<10x1xf32>
    %cst_167 = arith.constant 3.200000e+01 : f32
    %365 = vector.broadcast %cst_167 : f32 to vector<10x1xf32>
    %366 = arith.divf %364, %365 : vector<10x1xf32>
    %367 = arith.mulf %361, %361 : vector<10x1xf32>
    %368 = arith.subf %366, %367 : vector<10x1xf32>
    %cst_168 = arith.constant 0.000000e+00 : f32
    %369 = vector.broadcast %cst_168 : f32 to vector<10x1xf32>
    %370 = arith.maximumf %368, %369 : vector<10x1xf32>
    %371 = vector.broadcast %361 : vector<10x1xf32> to vector<10x32xf32>
    %372 = arith.subf %355, %371 : vector<10x32xf32>
    %cst_169 = arith.constant 9.99999974E-6 : f32
    %373 = vector.broadcast %cst_169 : f32 to vector<10x1xf32>
    %374 = arith.addf %370, %373 : vector<10x1xf32>
    %375 = math.rsqrt %374 : vector<10x1xf32>
    %376 = vector.broadcast %375 : vector<10x1xf32> to vector<10x32xf32>
    %377 = arith.mulf %372, %376 : vector<10x32xf32>
    %378 = vector.broadcast %356 : vector<1x32xf32> to vector<10x32xf32>
    %379 = arith.mulf %377, %378 : vector<10x32xf32>
    %380 = vector.broadcast %357 : vector<1x32xf32> to vector<10x32xf32>
    %381 = arith.addf %379, %380 : vector<10x32xf32>
    %382 = vector.extract_strided_slice %381 {offsets = [0, 0], sizes = [1, 32], strides = [1, 1]} : vector<10x32xf32> to vector<1x32xf32>
    %383 = vector.extract_strided_slice %381 {offsets = [5, 0], sizes = [1, 32], strides = [1, 1]} : vector<10x32xf32> to vector<1x32xf32>
    %384 = tpu.concatenate %382, %383 in 0 : vector<1x32xf32>, vector<1x32xf32> -> vector<2x32xf32>
    %c0_170 = arith.constant 0 : index
    %c0_171 = arith.constant 0 : index
    %385 = vector.load %arg20[%c0_170, %c0_171] : memref<32x16xf32, #tpu.memory_space<vmem>>, vector<32x16xf32>
    %cst_172 = arith.constant dense<0.000000e+00> : vector<2x16xf32>
    %386 = tpu.matmul %384, %385, %cst_172 {dimension_numbers = #tpu.dot_dimension_numbers<[1], [0], [0], [1], [0, 0, 1, 1], [], []>} : vector<2x32xf32>, vector<32x16xf32>, vector<2x16xf32> -> vector<2x16xf32>
    %c0_173 = arith.constant 0 : index
    %c0_174 = arith.constant 0 : index
    %387 = vector.load %arg21[%c0_173, %c0_174] : memref<1x16xf32, #tpu.memory_space<vmem>>, vector<1x16xf32>
    %388 = vector.broadcast %387 : vector<1x16xf32> to vector<2x16xf32>
    %389 = arith.addf %386, %388 : vector<2x16xf32>
    %c0_175 = arith.constant 0 : index
    %c0_176 = arith.constant 0 : index
    %390 = vector.load %arg23[%c0_175, %c0_176] : memref<2x32xf32, #tpu.memory_space<vmem>>, vector<2x32xf32>
    tpu.vector_store %arg23[%c0_175, %c0_176], %384 {strides = array<i32>} : memref<2x32xf32, #tpu.memory_space<vmem>>, vector<2x32xf32>,
    %c0_177 = arith.constant 0 : index
    %c0_178 = arith.constant 0 : index
    %391 = vector.load %arg22[%c0_177, %c0_178] : memref<2x16xf32, #tpu.memory_space<vmem>>, vector<2x16xf32>
    tpu.vector_store %arg22[%c0_177, %c0_178], %389 {strides = array<i32>} : memref<2x16xf32, #tpu.memory_space<vmem>>, vector<2x16xf32>,
    return
  }
  func.func @transform_0(%arg0: i32) -> (i32, i32) {
    %c0_i32 = arith.constant 0 : i32
    %c0_i32_0 = arith.constant 0 : i32
    %c0_i32_1 = arith.constant 0 : i32
    return %c0_i32, %c0_i32_0 : i32, i32
  }
  func.func @transform_1(%arg0: i32) -> (i32, i32) {
    %c0_i32 = arith.constant 0 : i32
    %c0_i32_0 = arith.constant 0 : i32
    %c0_i32_1 = arith.constant 0 : i32
    return %c0_i32, %c0_i32_0 : i32, i32
  }
  func.func @transform_2(%arg0: i32) -> (i32, i32) {
    %c0_i32 = arith.constant 0 : i32
    %c0_i32_0 = arith.constant 0 : i32
    %c0_i32_1 = arith.constant 0 : i32
    return %c0_i32, %c0_i32_0 : i32, i32
  }
  func.func @transform_3(%arg0: i32) -> (i32, i32) {
    %c0_i32 = arith.constant 0 : i32
    %c0_i32_0 = arith.constant 0 : i32
    %c0_i32_1 = arith.constant 0 : i32
    return %c0_i32, %c0_i32_0 : i32, i32
  }
  func.func @transform_4(%arg0: i32) -> (i32, i32) {
    %c0_i32 = arith.constant 0 : i32
    %c0_i32_0 = arith.constant 0 : i32
    %c0_i32_1 = arith.constant 0 : i32
    return %c0_i32, %c0_i32_0 : i32, i32
  }
  func.func @transform_5(%arg0: i32) -> (i32, i32, i32) {
    %c0_i32 = arith.constant 0 : i32
    %c0_i32_0 = arith.constant 0 : i32
    %c0_i32_1 = arith.constant 0 : i32
    %c0_i32_2 = arith.constant 0 : i32
    return %c0_i32, %c0_i32_0, %c0_i32_1 : i32, i32, i32
  }
  func.func @transform_6(%arg0: i32) -> (i32, i32, i32) {
    %c0_i32 = arith.constant 0 : i32
    %c0_i32_0 = arith.constant 0 : i32
    %c0_i32_1 = arith.constant 0 : i32
    %c0_i32_2 = arith.constant 0 : i32
    return %c0_i32, %c0_i32_0, %c0_i32_1 : i32, i32, i32
  }
  func.func @transform_7(%arg0: i32) -> (i32, i32, i32) {
    %c0_i32 = arith.constant 0 : i32
    %c0_i32_0 = arith.constant 0 : i32
    %c0_i32_1 = arith.constant 0 : i32
    %c0_i32_2 = arith.constant 0 : i32
    return %c0_i32, %c0_i32_0, %c0_i32_1 : i32, i32, i32
  }
  func.func @transform_8(%arg0: i32) -> (i32, i32, i32) {
    %c0_i32 = arith.constant 0 : i32
    %c0_i32_0 = arith.constant 0 : i32
    %c0_i32_1 = arith.constant 0 : i32
    %c0_i32_2 = arith.constant 0 : i32
    return %c0_i32, %c0_i32_0, %c0_i32_1 : i32, i32, i32
  }
  func.func @transform_9(%arg0: i32) -> (i32, i32, i32) {
    %c0_i32 = arith.constant 0 : i32
    %c0_i32_0 = arith.constant 0 : i32
    %c0_i32_1 = arith.constant 0 : i32
    %c0_i32_2 = arith.constant 0 : i32
    return %c0_i32, %c0_i32_0, %c0_i32_1 : i32, i32, i32
  }
  func.func @transform_10(%arg0: i32) -> (i32, i32, i32) {
    %c0_i32 = arith.constant 0 : i32
    %c0_i32_0 = arith.constant 0 : i32
    %c0_i32_1 = arith.constant 0 : i32
    %c0_i32_2 = arith.constant 0 : i32
    return %c0_i32, %c0_i32_0, %c0_i32_1 : i32, i32, i32
  }
  func.func @transform_11(%arg0: i32) -> (i32, i32, i32) {
    %c0_i32 = arith.constant 0 : i32
    %c0_i32_0 = arith.constant 0 : i32
    %c0_i32_1 = arith.constant 0 : i32
    %c0_i32_2 = arith.constant 0 : i32
    return %c0_i32, %c0_i32_0, %c0_i32_1 : i32, i32, i32
  }
  func.func @transform_12(%arg0: i32) -> (i32, i32, i32) {
    %c0_i32 = arith.constant 0 : i32
    %c0_i32_0 = arith.constant 0 : i32
    %c0_i32_1 = arith.constant 0 : i32
    %c0_i32_2 = arith.constant 0 : i32
    return %c0_i32, %c0_i32_0, %c0_i32_1 : i32, i32, i32
  }
  func.func @transform_13(%arg0: i32) -> (i32, i32, i32) {
    %c0_i32 = arith.constant 0 : i32
    %c0_i32_0 = arith.constant 0 : i32
    %c0_i32_1 = arith.constant 0 : i32
    %c0_i32_2 = arith.constant 0 : i32
    return %c0_i32, %c0_i32_0, %c0_i32_1 : i32, i32, i32
  }
  func.func @transform_14(%arg0: i32) -> (i32, i32, i32) {
    %c0_i32 = arith.constant 0 : i32
    %c0_i32_0 = arith.constant 0 : i32
    %c0_i32_1 = arith.constant 0 : i32
    %c0_i32_2 = arith.constant 0 : i32
    return %c0_i32, %c0_i32_0, %c0_i32_1 : i32, i32, i32
  }
  func.func @transform_15(%arg0: i32) -> (i32, i32, i32) {
    %c0_i32 = arith.constant 0 : i32
    %c0_i32_0 = arith.constant 0 : i32
    %c0_i32_1 = arith.constant 0 : i32
    %c0_i32_2 = arith.constant 0 : i32
    return %c0_i32, %c0_i32_0, %c0_i32_1 : i32, i32, i32
  }
  func.func @transform_16(%arg0: i32) -> (i32, i32, i32) {
    %c0_i32 = arith.constant 0 : i32
    %c0_i32_0 = arith.constant 0 : i32
    %c0_i32_1 = arith.constant 0 : i32
    %c0_i32_2 = arith.constant 0 : i32
    return %c0_i32, %c0_i32_0, %c0_i32_1 : i32, i32, i32
  }
  func.func @transform_17(%arg0: i32) -> (i32, i32) {
    %c0_i32 = arith.constant 0 : i32
    %c0_i32_0 = arith.constant 0 : i32
    %c0_i32_1 = arith.constant 0 : i32
    return %c0_i32, %c0_i32_0 : i32, i32
  }
  func.func @transform_18(%arg0: i32) -> (i32, i32) {
    %c0_i32 = arith.constant 0 : i32
    %c0_i32_0 = arith.constant 0 : i32
    %c0_i32_1 = arith.constant 0 : i32
    return %c0_i32, %c0_i32_0 : i32, i32
  }
  func.func @transform_19(%arg0: i32) -> (i32, i32) {
    %c0_i32 = arith.constant 0 : i32
    %c0_i32_0 = arith.constant 0 : i32
    %c0_i32_1 = arith.constant 0 : i32
    return %c0_i32, %c0_i32_0 : i32, i32
  }
  func.func @transform_20(%arg0: i32) -> (i32, i32) {
    %c0_i32 = arith.constant 0 : i32
    %c0_i32_0 = arith.constant 0 : i32
    %c0_i32_1 = arith.constant 0 : i32
    return %c0_i32, %c0_i32_0 : i32, i32
  }
  func.func @transform_21(%arg0: i32) -> (i32, i32) {
    %c0_i32 = arith.constant 0 : i32
    %c0_i32_0 = arith.constant 0 : i32
    %c0_i32_1 = arith.constant 0 : i32
    return %c0_i32, %c0_i32_0 : i32, i32
  }
  func.func @transform_22(%arg0: i32) -> (i32, i32) {
    %c0_i32 = arith.constant 0 : i32
    %c0_i32_0 = arith.constant 0 : i32
    %c0_i32_1 = arith.constant 0 : i32
    return %c0_i32, %c0_i32_0 : i32, i32
  }
}

</mosaic_0001>

<bundles_post_ra>
// kernel: tile.7
= control target key start
LH: loop header
LB: loop body
LE: loop exit
PB: predicated region body
PF: predicated region fallthrough
CT: control target
= control target key end

     0   :  { %vm3_vm0 = vcmask 261120   ;;  %s34_s0 = inlined_call_operand.vmem [shape: f32[2,5,32], index: 0, kind: input, shape index: {}]   ;;  %s35_s1 = inlined_call_operand.vmem [shape: f32[10,32], index: 1, kind: output, shape index: {}]  }
   0x1   :  { %v2_v0 = vld [vmem:[%s34_s0] sm:$0x1f]   ;;  %v10_v1 = vld [vmem:[%s34_s0 + $0x8] sm:$0x1f]  }
   0x2   :  { %4 = vst.msk [vmem:[%s35_s1] sm:$0x1f] %vm3_vm0, %v2_v0   ;;  %11 = vst.msk [vmem:[%s35_s1 + $0x5] sm:$0x1f] %vm3_vm0, %v10_v1  }

// kernel: _lambda_.1
= control target key start
LH: loop header
LB: loop body
LE: loop exit
PB: predicated region body
PF: predicated region fallthrough
CT: control target
= control target key end

     0   :  { %s4175_s0 = inlined_call_operand.vmem [shape: f32[8,192], index: 0, kind: input, shape index: {}]   ;;  %s4176_s1 = inlined_call_operand.vmem [shape: f32[192,32], index: 1, kind: input, shape index: {}]   ;;  %s4177_s2 = inlined_call_operand.vmem [shape: f32[1,32], index: 2, kind: input, shape index: {}, may-alias: {2,18}]   ;;  %s4178_s3 = inlined_call_operand.vmem [shape: f32[1,32], index: 3, kind: input, shape index: {}]   ;;  %s4179_s4 = inlined_call_operand.vmem [shape: f32[10,32], index: 4, kind: input, shape index: {}]   ;;  %s4180_s5 = inlined_call_operand.vmem [shape: f32[2,1,32], index: 5, kind: input, shape index: {}, may-alias: {5,11}]   ;;  %s4181_s6 = inlined_call_operand.vmem [shape: f32[2,1,32], index: 6, kind: input, shape index: {}, may-alias: {6,10,12,16}]   ;;  %s4182_s7 = inlined_call_operand.vmem [shape: f32[2,32,96], index: 7, kind: input, shape index: {}]   ;;  %s4183_s8 = inlined_call_operand.vmem [shape: f32[2,1,96], index: 8, kind: input, shape index: {}]   ;;  %s4184_s9 = inlined_call_operand.vmem [shape: f32[2,32,32], index: 9, kind: input, shape index: {}]   ;;  %s4185_s10 = inlined_call_operand.vmem [shape: f32[2,1,32], index: 10, kind: input, shape index: {}, may-alias: {6,10,12,16}]   ;;  %s4186_s11 = inlined_call_operand.vmem [shape: f32[2,1,32], index: 11, kind: input, shape index: {}, may-alias: {5,11}]   ;;  %s4187_s12 = inlined_call_operand.vmem [shape: f32[2,1,32], index: 12, kind: input, shape index: {}, may-alias: {6,10,12,16}]   ;;  %s4188_s13 = inlined_call_operand.vmem [shape: f32[2,32,128], index: 13, kind: input, shape index: {}]   ;;  %s4189_s14 = inlined_call_operand.vmem [shape: f32[2,1,128], index: 14, kind: input, shape index: {}]   ;;  %s4190_s15 = inlined_call_operand.vmem [shape: f32[2,128,32], index: 15, kind: input, shape index: {}]   ;;  %s4191_s16 = inlined_call_operand.vmem [shape: f32[2,1,32], index: 16, kind: input, shape index: {}, may-alias: {6,10,12,16}]   ;;  %s4192_s17 = inlined_call_operand.vmem [shape: f32[1,32], index: 17, kind: input, shape index: {}]   ;;  %s4193_s18 = inlined_call_operand.vmem [shape: f32[1,32], index: 18, kind: input, shape index: {}, may-alias: {2,18}]   ;;  %s4194_s19 = inlined_call_operand.vmem [shape: f32[32,16], index: 19, kind: input, shape index: {}]   ;;  %s4195_s20 = inlined_call_operand.vmem [shape: f32[1,16], index: 20, kind: input, shape index: {}]   ;;  %s4196_s21 = inlined_call_operand.hbm [shape: f32[2,16], index: 21, kind: output, shape index: {0}]   ;;  %s4197_s22 = inlined_call_operand.hbm [shape: f32[2,32], index: 22, kind: output, shape index: {1}]  }
   0x1   :  { %4209 = sst [smem:[#allocation8_spill]] %s4175_s0 }
   0x2   :  { %4210 = sst [smem:[#allocation9_spill]] %s4176_s1 }
   0x3   :  { %4211 = sst [smem:[#allocation10_spill]] %s4177_s2 }
   0x4   :  { %4212 = sst [smem:[#allocation11_spill]] %s4178_s3 }
   0x5   :  { %4213 = sst [smem:[#allocation12_spill]] %s4179_s4 }
   0x6   :  { %4214 = sst [smem:[#allocation13_spill]] %s4180_s5 }
   0x7   :  { %4215 = sst [smem:[#allocation14_spill]] %s4181_s6 }
   0x8   :  { %28 = vsyncpa [#allocation3], 0  ;;  %s4216_s29 = sld [smem:[#allocation9_spill]]  ;;  %v3441_v3 = vmov 0.0|0.0   ;;  %vm105_vm0 = vcmask 523264   ;;  %s4217_s0 = sld [smem:[#allocation8_spill]] }
   0x9   :  { %3170 = vmatprep.subr.bf16.mxu0 %v3441_v3 }
   0xe   :  { %v74_v0 = vld [vmem:[%s4216_s29] sm:$0xff]  ;;  %v75_v1 = vld [vmem:[%s4216_s29 + $0x8] sm:$0xff]  ;;  %v76_v2 = vld [vmem:[%s4216_s29 + $0x10] sm:$0xff] }
   0xf   :  { %v3171_v4 = vpack.c.bf16 %v75_v1, %v74_v0  ;;  %v77_v5 = vld [vmem:[%s4216_s29 + $0x18] sm:$0xff]  ;;  %v78_v7 = vld [vmem:[%s4216_s29 + $0x20] sm:$0xff]  ;;  %v79_v8 = vld [vmem:[%s4216_s29 + $0x28] sm:$0xff] }
  0x10   :  { %v3174_v6 = vpack.c.bf16 %v77_v5, %v76_v2  ;;  %v3177_v9 = vpack.c.bf16 %v79_v8, %v78_v7  ;;  %v80_v10 = vld [vmem:[%s4216_s29 + $0x30] sm:$0xff]  ;;  %v81_v11 = vld [vmem:[%s4216_s29 + $0x38] sm:$0xff]  ;;  %v73_v12 = vld [vmem:[%s4217_s0 + $0x8] sm:$0xff] }
  0x11   :  { %3172 = vmatpush1.bf16.msra.mxu0 %v3171_v4  ;;  %2733 = vmatprep.mubr.msk.f32.mxu0 %vm105_vm0, %v73_v12 }
  0x12   :  { %3173 = vmatprep.subr.bf16.mxu0 %v3441_v3 }
  0x15   :  { %3175 = vmatpush1.bf16.msra.mxu0 %v3174_v6 }
  0x16   :  { %3176 = vmatprep.subr.bf16.mxu0 %v3441_v3 }
  0x17   :  { %29 = vsyncpa [#allocation5], 0  ;;  %v3180_v13 = vpack.c.bf16 %v81_v11, %v80_v10  ;;  %v82_v14 = vld [vmem:[%s4216_s29 + $0x40] sm:$0xff]  ;;  %v83_v15 = vld [vmem:[%s4216_s29 + $0x48] sm:$0xff]  ;;  %v184_v39 = vlaneseq  ;;  %s4218_s28 = sld [smem:[#allocation10_spill]]  ;;  %vm191_vm1 = vcmask 1040384  }
  0x18   :  { %v3183_v16 = vpack.c.bf16 %v83_v15, %v82_v14  ;;  %v84_v17 = vld [vmem:[%s4216_s29 + $0x50] sm:$0xff]  ;;  %v85_v18 = vld [vmem:[%s4216_s29 + $0x58] sm:$0xff]  ;;  %v86_v20 = vld [vmem:[%s4216_s29 + $0x60] sm:$0xff]  ;;  %vm193_vm2 = vcmask 1044480   ;;  %vm195_vm3 = vcmask 1045504   ;;  %s4220_s1 = sld [smem:[#allocation12_spill]] }
  0x19   :  { %3178 = vmatpush1.bf16.msra.mxu0 %v3177_v9  ;;  %v3186_v19 = vpack.c.bf16 %v85_v18, %v84_v17  ;;  %v87_v21 = vld [vmem:[%s4216_s29 + $0x68] sm:$0xff]  ;;  %v88_v23 = vld [vmem:[%s4216_s29 + $0x70] sm:$0xff]  ;;  %v89_v24 = vld [vmem:[%s4216_s29 + $0x78] sm:$0xff]  ;;  %v185_v40 = vshrl.u32 %v184_v39, 7  ;;  %vm203_vm4 = vcmask 261120   ;;  %vm207_vm5 = vcmask 254976  }
  0x1a   :  { %3179 = vmatprep.subr.bf16.mxu0 %v3441_v3  ;;  %v3189_v22 = vpack.c.bf16 %v87_v21, %v86_v20  ;;  %v3192_v25 = vpack.c.bf16 %v89_v24, %v88_v23  ;;  %v90_v26 = vld [vmem:[%s4216_s29 + $0x80] sm:$0xff]  ;;  %v91_v27 = vld [vmem:[%s4216_s29 + $0x88] sm:$0xff]  ;;  %v92_v29 = vld [vmem:[%s4216_s29 + $0x90] sm:$0xff]  ;;  %s4222_s5 = sld [smem:[#allocation14_spill]]  ;;  %vm3443_vm6 = vmmov 0   ;;  %s3444_s25 = smov 96  }
  0x1b   :  { %v3195_v28 = vpack.c.bf16 %v91_v27, %v90_v26  ;;  %v93_v30 = vld [vmem:[%s4216_s29 + $0x98] sm:$0xff]  ;;  %v94_v32 = vld [vmem:[%s4216_s29 + $0xa0] sm:$0xff]  ;;  %v95_v33 = vld [vmem:[%s4216_s29 + $0xa8] sm:$0xff]  ;;  %v186_v42 = vsub.s32 0, %v185_v40  ;;  %s3445_s26 = smov 80   ;;  %vm349_vm7 = vcmask 130048  }
  0x1c   :  { %v3198_v31 = vpack.c.bf16 %v93_v30, %v92_v29  ;;  %v3201_v34 = vpack.c.bf16 %v95_v33, %v94_v32  ;;  %v96_v35 = vld [vmem:[%s4216_s29 + $0xb0] sm:$0xff]  ;;  %v97_v36 = vld [vmem:[%s4216_s29 + $0xb8] sm:$0xff]  ;;  %v72_v38 = vld [vmem:[%s4217_s0] sm:$0xff]  ;;  %s4219_s29 = sld [smem:[#allocation11_spill]]  ;;  %s4221_s0 = sld [smem:[#allocation13_spill]]  ;;  %vm425_vm8 = vcmask 36864  }
  0x1d   :  { %3181 = vmatpush1.bf16.msra.mxu0 %v3180_v13  ;;  %v3204_v37 = vpack.c.bf16 %v97_v36, %v96_v35  ;;  %v2732_v41 = vld [vmem:[%s4218_s28] ss:$0 sm:$0xff]  ;;  %v255_v0 = vld [vmem:[%s4182_s7 + $0x8] sm:$0xff]  ;;  %v256_v1 = vld [vmem:[%s4182_s7 + $0x10] sm:$0xff]  ;;  %s3446_s2 = smov 64   ;;  %s4207_s27 = smov 112  }
  0x1e   :  { %3182 = vmatprep.subr.bf16.mxu0 %v3441_v3  ;;  %v198_v51 = vld [vmem:[%s4220_s1 + $0x8] sm:$0x3]  ;;  %v197_v52 = vld [vmem:[%s4220_s1] sm:$0xff]  ;;  %v257_v4 = vld [vmem:[%s4182_s7 + $0x18] sm:$0xff]  ;;  %vm439_vm9 = vcmask 39936   ;;  %s4205_s3 = smov 48  }
  0x1f   :  { %v254_v63 = vld [vmem:[%s4182_s7] sm:$0xff]  ;;  %v3210_v5 = vpack.c.bf16 %v257_v4, %v256_v1  ;;  %vm688_vm10 = vcmask 1042432   ;;  %s4203_s28 = smov 16  }
  0x20   :  { %v3206_v2 = vpack.c.bf16 %v255_v0, %v254_v63  ;;  %v2735_v26 = vld [vmem:[%s4222_s5] ss:$0 sm:$0xff] }
  0x21   :  { %3184 = vmatpush1.bf16.msra.mxu0 %v3183_v16  ;;  %v2736_v35 = vld [vmem:[%s4183_s8] ss:$0 sm:$0xff] }
  0x22   :  { %3185 = vmatprep.subr.bf16.mxu0 %v3441_v3  ;;  %v179_v43 = vld [vmem:[%s4219_s29] sm:$0x1]  ;;  %3207 = vmatprep.subr.bf16.mxu1 %v3206_v2  ;;  %s4225_s29 = smov 16  }
  0x23   :  { %v187_v47 = vrot.slane %v179_v43, %v186_v42  ;;  %3209 = vmatpush3.bf16.msra.mxu1 %v3206_v2  ;;  %v2734_v24 = vld [vmem:[%s4221_s0] ss:$0 sm:$0xff] }
  0x24   :  { %3211 = vmatprep.subr.bf16.mxu1 %v3210_v5 }
  0x25   :  { %3187 = vmatpush1.bf16.msra.mxu0 %v3186_v19 }
  0x26   :  { %3188 = vmatprep.subr.bf16.mxu0 %v3441_v3 }
  0x27   :  { %3213 = vmatpush3.bf16.msra.mxu1 %v3210_v5 }
  0x29   :  { %3190 = vmatpush1.bf16.msra.mxu0 %v3189_v22 }
  0x2a   :  { %3191 = vmatprep.subr.bf16.mxu0 %v3441_v3 }
  0x2d   :  { %3193 = vmatpush1.bf16.msra.mxu0 %v3192_v25 }
  0x2e   :  { %3194 = vmatprep.subr.bf16.mxu0 %v3441_v3 }
  0x31   :  { %3196 = vmatpush1.bf16.msra.mxu0 %v3195_v28 }
  0x32   :  { %3197 = vmatprep.subr.bf16.mxu0 %v3441_v3 }
  0x35   :  { %3199 = vmatpush1.bf16.msra.mxu0 %v3198_v31 }
  0x36   :  { %3200 = vmatprep.subr.bf16.mxu0 %v3441_v3 }
  0x39   :  { %3202 = vmatpush1.bf16.msra.mxu0 %v3201_v34  ;;  %v3442_v34 = vmov 0.0  }
  0x3a   :  { %3203 = vmatprep.subr.bf16.mxu0 %v3441_v3  ;;  %2954 = vmatprep.subr.mxu1 %v3442_v34 }
  0x3d   :  { %3205 = vmatpush1.bf16.msra.mxu0 %v3204_v37 }
  0x40   :  { %174 = vmatmul.mubr.f32.vlgmr.msra.gmra.mrb[0].mxu0 %v72_v38 }
 0x113   :  { %v175_v44 = vpop.f32.mrb[0].mxu0 }
 0x114   :  { %v176_v45 = vadd.f32 %v2732_v41, %v175_v44  ;;  %v177_v46 = vpop.f32.mrb[1].mxu0 }
 0x116   :  { %v181_v48 = vrot.slane %v176_v45, 7  ;;  %v189_v49 = vrot.slane %v176_v45, 6 }
 0x118   :  { %v192_v50 = vsel %vm191_vm1, %v179_v43, %v181_v48  ;;  %v3671_v55 = vadd.f32 %v198_v51, %v189_v49 }
 0x119   :  { %v194_v53 = vsel %vm193_vm2, %v192_v50, %v187_v47 }
 0x11a   :  { %v196_v54 = vsel %vm195_vm3, %v194_v53, %v189_v49  ;;  %v215_v60 = vmul.f32 %v3671_v55, %v3671_v55  ;;  %v208_v61 = vsel %vm207_vm5, %v3671_v55, 0.0 }
 0x11b   :  { %v3673_v56 = vadd.f32 %v197_v52, %v196_v54 }
 0x11c   :  { %v219_v62 = vsel %vm207_vm5, %v215_v60, 0.0 }
 0x11d   :  { %v204_v57 = vsel %vm203_vm4, %v3673_v56, 0.0  ;;  %v214_v58 = vmul.f32 %v3673_v56, %v3673_v56 }
 0x11e   :  { %205 = vadd.xlane.f32.xlu0 %v204_v57 }
 0x11f   :  { %v216_v59 = vsel %vm203_vm4, %v214_v58, 0.0 }
 0x120   :  { %217 = vadd.xlane.f32.xlu1 %v216_v59 }
 0x122   :  { %209 = vadd.xlane.f32.xlu0 %v208_v61 }
 0x124   :  { %220 = vadd.xlane.f32.xlu1 %v219_v62 }
 0x1ab   :  { %v206_v6 = vpop.xlane.xlu0 %205 }
 0x1ac   :  { %v212_v7 = vmul.f32 0.03125, %v206_v6 }
 0x1ad   :  { %v218_v8 = vpop.xlane.xlu1 %217 }
 0x1ae   :  { %v224_v9 = vmul.f32 %v212_v7, %v212_v7  ;;  %v222_v10 = vmul.f32 0.03125, %v218_v8  ;;  %v230_v22 = vsub.f32 %v3673_v56, %v212_v7 }
 0x1af   :  { %v210_v11 = vpop.xlane.xlu0 %209 }
 0x1b0   :  { %v226_v12 = vsub.f32 %v222_v10, %v224_v9  ;;  %v213_v13 = vmul.f32 0.03125, %v210_v11 }
 0x1b1   :  { %v221_v14 = vpop.xlane.xlu1 %220 }
 0x1b2   :  { %v228_v15 = vmax.f32 %v226_v12, 0.0  ;;  %v225_v16 = vmul.f32 %v213_v13, %v213_v13  ;;  %v223_v17 = vmul.f32 0.03125, %v221_v14  ;;  %v231_v27 = vsub.f32 %v3671_v55, %v213_v13 }
 0x1b4   :  { %v232_v18 = vadd.f32 1e-05, %v228_v15  ;;  %v227_v19 = vsub.f32 %v223_v17, %v225_v16 }
 0x1b6   :  { %3335 = vrsqrt.f32 %v232_v18  ;;  %v229_v20 = vmax.f32 %v227_v19, 0.0 }
 0x1b8   :  { %v233_v21 = vadd.f32 1e-05, %v229_v20 }
 0x1ba   :  { %3337 = vrsqrt.f32 %v233_v21 }
 0x1c0   :  { %v3336_v23 = vpop.eup %3335 }
 0x1c1   :  { %v236_v25 = vmul.f32 %v3336_v23, %v230_v22 }
 0x1c3   :  { %v244_v28 = vmul.f32 %v2734_v24, %v236_v25 }
 0x1c4   :  { %v3338_v29 = vpop.eup %3337 }
 0x1c5   :  { %v237_v30 = vmul.f32 %v3338_v29, %v231_v27  ;;  %v252_v31 = vadd.f32 %v2735_v26, %v244_v28 }
 0x1c7   :  { %v245_v32 = vmul.f32 %v2734_v24, %v237_v30  ;;  %2951 = vmatprep.mubr.msk.f32.mxu1 %vm203_vm4, %v252_v31 }
 0x1c9   :  { %v253_v33 = vadd.f32 %v2735_v26, %v245_v32 }
 0x1cb   :  { %2952 = vmatmul.mubr.msk.f32.vlgmr.msra.gmra.mrb[0].mxu1 %vm203_vm4, %v253_v33 }
 0x1cc   :  { %2956 = vmatprep.mubr.msk.f32.mxu1 %vm3443_vm6, %v3442_v34 }
 0x29e   :  { %v2953_v36 = vpop.f32.mrb[0].mxu1 }
 0x29f   :  { %v3713_v37 = vadd.f32 %v2953_v36, %v2736_v35  ;;  %v337_v38 = vpop.f32.mrb[1].mxu1 }
 0x2a0   :  { %v3715_v39 = vadd.f32 %v2736_v35, %v337_v38 }
 0x2a1   :  { %v690_v7 = vrot.slane %v3713_v37, 5 }
 0x2a2   :  { %347 = vrot.lane.b32.xlu0 %v3715_v39, %s3444_s25  ;;  %v689_v8 = vrot.slane %v3715_v39, 5 }
 0x2a4   :  { %v691_v9 = vsel %vm688_vm10, %v689_v8, %v690_v7 }
 0x2a6   :  { %517 = vrot.lane.b32.xlu0 %v3715_v39, %s3445_s26 }
 0x314   :  { %v348_v40 = vpop.permute.xlu0 %347 }
 0x315   :  { %2955 = vmatpush3.xpose.msk.msra.mxu1 %vm349_vm7, %v348_v40 }
 0x316   :  { %2959 = vmatprep.subr.mxu1 %v3442_v34 }
 0x318   :  { %2957 = vmatmul.mubr.msk.f32.vlgmr.msra.gmra.mrb[2].mxu1 %vm349_vm7, %v3715_v39  ;;  %v518_v54 = vpop.permute.xlu0 %517 }
 0x319   :  { %2961 = vmatprep.mubr.msk.f32.mxu1 %vm3443_vm6, %v3442_v34 }
 0x3eb   :  { %v420_v41 = vpop.f32.mrb[2].mxu1 }
 0x3ec   :  { %v424_v42 = vmul.f32 0.25, %v420_v41  ;;  %v2958_v43 = vpop.f32.mrb[3].mxu1 }
 0x3ee   :  { %v426_v44 = vsel %vm425_vm8, %v424_v42, -inf }
 0x3ef   :  { %427 = vmax.xlane.f32.xlu1 %v426_v44 }
 0x400   :  { %437 = vrot.lane.b32.xlu1 %v3715_v39, %s3446_s2 }
 0x47c   :  { %v428_v45 = vpop.xlane.xlu1 %427 }
 0x47d   :  { %v429_v46 = vsub.f32 %v424_v42, %v428_v45 }
 0x47f   :  { %v430_v47 = vmul.f32 1.442695, %v429_v46 }
 0x480   :  { %v438_v48 = vpop.permute.xlu1 %437 }
 0x481   :  { %3339 = vpow2.f32 %v430_v47  ;;  %2960 = vmatpush3.msk.msra.mxu1 %vm193_vm2, %v438_v48  ;;  %v1033_v47 = vld [vmem:[%s4184_s9] sm:$0xff]  ;;  %v1034_v48 = vld [vmem:[%s4184_s9 + $0x8] sm:$0xff] }
 0x482   :  { %2964 = vmatprep.subr.mxu1 %v3442_v34 }
 0x48b   :  { %v3340_v49 = vpop.eup %3339 }
 0x48c   :  { %v432_v50 = vsel %vm425_vm8, %v3340_v49, 0.0 }
 0x48d   :  { %433 = vadd.xlane.f32.xlu1 %v432_v50  ;;  %v1035_v50 = vld [vmem:[%s4184_s9 + $0x10] sm:$0xff] }
 0x49e   :  { %515 = vrot.lane.b32.xlu1 %v3715_v39, %s4207_s27 }
 0x51a   :  { %v434_v51 = vpop.xlane.xlu1 %433 }
 0x51b   :  { %3341 = vrcp.f32 %v434_v51  ;;  %v1036_v51 = vld [vmem:[%s4184_s9 + $0x18] sm:$0xff] }
 0x51e   :  { %v516_v57 = vpop.permute.xlu1 %515 }
 0x525   :  { %v3342_v52 = vpop.eup %3341 }
 0x526   :  { %v436_v53 = vmul.f32 %v3342_v52, %v3340_v49  ;;  %v3214_v49 = vpack.c.bf16 %v1034_v48, %v1033_v47  ;;  %v3218_v52 = vpack.c.bf16 %v1036_v51, %v1035_v50  ;;  %v1289_v47 = vld [vmem:[%s4190_s15 + $0x8] sm:$0xff]  ;;  %v1291_v50 = vld [vmem:[%s4190_s15 + $0x18] sm:$0xff] }
 0x528   :  { %2962 = vmatmul.mubr.msk.f32.vlgmr.msra.gmra.mrb[4].mxu1 %vm439_vm9, %v436_v53 }
 0x529   :  { %2965 = vmatpush3.xpose.msk.msra.mxu1 %vm349_vm7, %v518_v54  ;;  %2966 = vmatprep.mubr.msk.f32.mxu1 %vm3443_vm6, %v3442_v34 }
 0x52a   :  { %2969 = vmatprep.subr.mxu1 %v3442_v34 }
 0x52c   :  { %2967 = vmatmul.mubr.msk.f32.vlgmr.msra.gmra.mrb[6].mxu1 %vm349_vm7, %v516_v57 }
 0x52d   :  { %2971 = vmatprep.mubr.msk.f32.mxu1 %vm3443_vm6, %v3442_v34 }
 0x5fb   :  { %v3743_v58 = vpop.f32.mrb[4].mxu1 }
 0x5fc   :  { %v2963_v59 = vpop.f32.mrb[5].mxu1 }
 0x5ff   :  { %v589_v60 = vpop.f32.mrb[6].mxu1 }
 0x600   :  { %v593_v61 = vmul.f32 0.25, %v589_v60  ;;  %v2968_v62 = vpop.f32.mrb[7].mxu1 }
 0x602   :  { %v594_v63 = vsel %vm425_vm8, %v593_v61, -inf }
 0x603   :  { %595 = vmax.xlane.f32.xlu0 %v594_v63 }
 0x619   :  { %605 = vrot.lane.b32.xlu0 %v3715_v39, %s4205_s3 }
 0x690   :  { %v596_v0 = vpop.xlane.xlu0 %595 }
 0x691   :  { %v597_v1 = vsub.f32 %v593_v61, %v596_v0 }
 0x693   :  { %v598_v2 = vmul.f32 1.442695, %v597_v1  ;;  %v2757_v1 = vld [vmem:[%s4185_s10] ss:$0 sm:$0xff] }
 0x694   :  { %v606_v4 = vpop.permute.xlu0 %605 }
 0x695   :  { %3343 = vpow2.f32 %v598_v2  ;;  %2970 = vmatpush3.msk.msra.mxu1 %vm193_vm2, %v606_v4 }
 0x696   :  { %2974 = vmatprep.subr.mxu1 %v3442_v34 }
 0x69f   :  { %v3344_v5 = vpop.eup %3343 }
 0x6a0   :  { %v600_v6 = vsel %vm425_vm8, %v3344_v5, 0.0 }
 0x6a1   :  { %601 = vadd.xlane.f32.xlu1 %v600_v6 }
 0x6b2   :  { %692 = vrot.lane.b32.xlu1 %v691_v9, %s3444_s25 }
 0x72e   :  { %v602_v10 = vpop.xlane.xlu1 %601 }
 0x72f   :  { %3345 = vrcp.f32 %v602_v10 }
 0x732   :  { %v693_v13 = vpop.permute.xlu1 %692 }
 0x739   :  { %v3346_v11 = vpop.eup %3345 }
 0x73a   :  { %v604_v12 = vmul.f32 %v3346_v11, %v3344_v5  ;;  %v1178_v11 = vld [vmem:[%s4188_s13] sm:$0xff] }
 0x73c   :  { %2972 = vmatmul.mubr.msk.f32.vlgmr.msra.gmra.mrb[8].mxu1 %vm439_vm9, %v604_v12  ;;  %v1179_v12 = vld [vmem:[%s4188_s13 + $0x8] sm:$0xff] }
 0x73d   :  { %2975 = vmatpush3.xpose.msk.msra.mxu1 %vm349_vm7, %v693_v13  ;;  %2976 = vmatprep.mubr.msk.f32.mxu1 %vm3443_vm6, %v3442_v34  ;;  %v1180_v13 = vld [vmem:[%s4188_s13 + $0x10] sm:$0xff] }
 0x73e   :  { %2979 = vmatprep.subr.mxu1 %v3442_v34 }
 0x740   :  { %2977 = vmatmul.mubr.msk.f32.vlgmr.msra.gmra.mrb[10].mxu1 %vm349_vm7, %v691_v9 }
 0x741   :  { %2981 = vmatprep.mubr.msk.f32.mxu1 %vm3443_vm6, %v3442_v34 }
 0x80f   :  { %v3763_v14 = vpop.f32.mrb[8].mxu1 }
 0x810   :  { %v2973_v15 = vpop.f32.mrb[9].mxu1 }
 0x811   :  { %v1181_v15 = vld [vmem:[%s4188_s13 + $0x18] sm:$0xff] }
 0x813   :  { %v764_v16 = vpop.f32.mrb[10].mxu1 }
 0x814   :  { %v768_v17 = vmul.f32 0.25, %v764_v16  ;;  %v2978_v18 = vpop.f32.mrb[11].mxu1  ;;  %v3226_v16 = vpack.c.bf16 %v1181_v15, %v1180_v13 }
 0x816   :  { %v769_v19 = vsel %vm425_vm8, %v768_v17, -inf }
 0x817   :  { %770 = vmax.xlane.f32.xlu0 %v769_v19 }
 0x82d   :  { %780 = vrot.lane.b32.xlu0 %v691_v9, %s3446_s2 }
 0x831   :  { %857 = vrot.lane.b32.xlu0 %v691_v9, %s4207_s27 }
 0x8a4   :  { %v771_v20 = vpop.xlane.xlu0 %770 }
 0x8a5   :  { %v772_v21 = vsub.f32 %v768_v17, %v771_v20 }
 0x8a7   :  { %v773_v22 = vmul.f32 1.442695, %v772_v21 }
 0x8a8   :  { %v781_v23 = vpop.permute.xlu0 %780 }
 0x8a9   :  { %3347 = vpow2.f32 %v773_v22  ;;  %2980 = vmatpush3.msk.msra.mxu1 %vm193_vm2, %v781_v23 }
 0x8aa   :  { %2984 = vmatprep.subr.mxu1 %v3442_v34 }
 0x8ac   :  { %v858_v30 = vpop.permute.xlu0 %857 }
 0x8b3   :  { %v3348_v24 = vpop.eup %3347 }
 0x8b4   :  { %v775_v25 = vsel %vm425_vm8, %v3348_v24, 0.0 }
 0x8b5   :  { %776 = vadd.xlane.f32.xlu1 %v775_v25 }
 0x8c6   :  { %859 = vrot.lane.b32.xlu1 %v691_v9, %s3445_s26 }
 0x942   :  { %v777_v26 = vpop.xlane.xlu1 %776 }
 0x943   :  { %3349 = vrcp.f32 %v777_v26 }
 0x946   :  { %v860_v29 = vpop.permute.xlu1 %859 }
 0x94d   :  { %v3350_v27 = vpop.eup %3349 }
 0x94e   :  { %v779_v28 = vmul.f32 %v3350_v27, %v3348_v24 }
 0x950   :  { %2982 = vmatmul.mubr.msk.f32.vlgmr.msra.gmra.mrb[12].mxu1 %vm439_vm9, %v779_v28 }
 0x951   :  { %2985 = vmatpush3.xpose.msk.msra.mxu1 %vm349_vm7, %v860_v29  ;;  %2986 = vmatprep.mubr.msk.f32.mxu1 %vm3443_vm6, %v3442_v34 }
 0x952   :  { %2989 = vmatprep.subr.mxu1 %v3442_v34 }
 0x954   :  { %2987 = vmatmul.mubr.msk.f32.vlgmr.msra.gmra.mrb[14].mxu1 %vm349_vm7, %v858_v30 }
 0x955   :  { %2991 = vmatprep.mubr.msk.f32.mxu1 %vm3443_vm6, %v3442_v34 }
 0xa23   :  { %v853_v31 = vpop.f32.mrb[12].mxu1 }
 0xa24   :  { %v2983_v32 = vpop.f32.mrb[13].mxu1 }
 0xa27   :  { %v931_v33 = vpop.f32.mrb[14].mxu1 }
 0xa28   :  { %v935_v35 = vmul.f32 0.25, %v931_v33  ;;  %v2988_v36 = vpop.f32.mrb[15].mxu1 }
 0xa29   :  { %v2758_v36 = vld [vmem:[%s4186_s11] ss:$0 sm:$0xff] }
 0xa2a   :  { %v936_v37 = vsel %vm425_vm8, %v935_v35, -inf }
 0xa2b   :  { %937 = vmax.xlane.f32.xlu1 %v936_v37 }
 0xab8   :  { %v938_v38 = vpop.xlane.xlu1 %937 }
 0xab9   :  { %v939_v39 = vsub.f32 %v935_v35, %v938_v38  ;;  %v2759_v38 = vld [vmem:[%s4187_s12] ss:$0 sm:$0xff] }
 0xabb   :  { %v940_v40 = vmul.f32 1.442695, %v939_v39 }
 0xabd   :  { %3351 = vpow2.f32 %v940_v40 }
 0xac7   :  { %v3352_v41 = vpop.eup %3351 }
 0xac8   :  { %v942_v42 = vsel %vm425_vm8, %v3352_v41, 0.0 }
 0xac9   :  { %943 = vadd.xlane.f32.xlu0 %v942_v42 }
 0xadf   :  { %947 = vrot.lane.b32.xlu0 %v691_v9, %s4205_s3 }
 0xb56   :  { %v944_v43 = vpop.xlane.xlu0 %943 }
 0xb57   :  { %3353 = vrcp.f32 %v944_v43 }
 0xb5a   :  { %v948_v44 = vpop.permute.xlu0 %947 }
 0xb5b   :  { %2990 = vmatpush3.msk.msra.mxu1 %vm193_vm2, %v948_v44 }
 0xb5c   :  { %3215 = vmatprep.subr.bf16.mxu1 %v3214_v49 }
 0xb61   :  { %v3354_v45 = vpop.eup %3353 }
 0xb62   :  { %v946_v46 = vmul.f32 %v3354_v45, %v3352_v41 }
 0xb64   :  { %2992 = vmatmul.mubr.msk.f32.vlgmr.msra.gmra.mrb[16].mxu1 %vm439_vm9, %v946_v46  ;;  %v1288_v46 = vld [vmem:[%s4190_s15] sm:$0xff] }
 0xb65   :  { %3217 = vmatpush3.bf16.msra.mxu1 %v3214_v49  ;;  %v3230_v48 = vpack.c.bf16 %v1289_v47, %v1288_v46  ;;  %v1290_v49 = vld [vmem:[%s4190_s15 + $0x10] sm:$0xff] }
 0xb66   :  { %3219 = vmatprep.subr.bf16.mxu1 %v3218_v52  ;;  %v3234_v51 = vpack.c.bf16 %v1291_v50, %v1290_v49  ;;  %v2770_v46 = vld [vmem:[%s4182_s7 + $0x30] sm:$0xff] }
 0xb69   :  { %3221 = vmatpush3.bf16.msra.mxu1 %v3218_v52  ;;  %v1292_v52 = vld [vmem:[%s4190_s15 + $0x20] sm:$0xff] }
 0xc37   :  { %v1020_v53 = vpop.f32.mrb[16].mxu1 }
 0xc38   :  { %1025 = vrot.lane.b32.xlu1 %v1020_v53, %s4203_s28  ;;  %v2993_v54 = vpop.f32.mrb[17].mxu1  ;;  %v1293_v53 = vld [vmem:[%s4190_s15 + $0x28] sm:$0xff] }
 0xc39   :  { %v3238_v54 = vpack.c.bf16 %v1293_v53, %v1292_v52 }
 0xc3c   :  { %683 = vrot.lane.b32.xlu1 %v3763_v14, %s4203_s28  ;;  %v3222_v14 = vpack.c.bf16 %v1179_v12, %v1178_v11 }
 0xc3e   :  { %3223 = vmatprep.subr.bf16.mxu1 %v3222_v14 }
 0xcaa   :  { %v1026_v57 = vpop.permute.xlu1 %1025 }
 0xcab   :  { %v1028_v59 = vsel %vm349_vm7, %v853_v31, %v1026_v57  ;;  %v1294_v57 = vld [vmem:[%s4190_s15 + $0x30] sm:$0xff] }
 0xcac   :  { %v1030_v60 = vrot.slane %v1028_v59, 3  ;;  %v1295_v59 = vld [vmem:[%s4190_s15 + $0x38] sm:$0xff] }
 0xcae   :  { %v684_v61 = vpop.permute.xlu1 %683 }
 0xcaf   :  { %v686_v62 = vsel %vm349_vm7, %v3743_v58, %v684_v61  ;;  %v1296_v61 = vld [vmem:[%s4190_s15 + $0x40] sm:$0xff] }
 0xcb0   :  { %v1032_v63 = vsel %vm193_vm2, %v686_v62, %v1030_v60  ;;  %v1297_v62 = vld [vmem:[%s4190_s15 + $0x48] sm:$0xff] }
 0xcb1   :  { %3002 = vmatprep.mubr.msk.f32.mxu1 %vm203_vm4, %v1032_v63  ;;  %v1298_v63 = vld [vmem:[%s4190_s15 + $0x50] sm:$0xff] }
 0xcb2   :  { %3003 = vmatmul.mubr.msk.f32.vlgmr.msra.gmra.mrb[18].mxu1 %vm203_vm4, %v1030_v60  ;;  %v3242_v60 = vpack.c.bf16 %v1295_v59, %v1294_v57 }
 0xcb3   :  { %3225 = vmatpush3.bf16.msra.mxu1 %v3222_v14 }
 0xcb4   :  { %3227 = vmatprep.subr.bf16.mxu1 %v3226_v16 }
 0xcb7   :  { %3229 = vmatpush3.bf16.msra.mxu1 %v3226_v16 }
 0xcb8   :  { %3231 = vmatprep.subr.bf16.mxu1 %v3230_v48 }
 0xd85   :  { %v3004_v0 = vpop.f32.mrb[18].mxu1 }
 0xd86   :  { %v1118_v2 = vadd.f32 %v3004_v0, %v3671_v55  ;;  %v1108_v4 = vpop.f32.mrb[19].mxu1  ;;  %v3246_v0 = vpack.c.bf16 %v1297_v62, %v1296_v61 }
 0xd87   :  { %v1117_v5 = vadd.f32 %v1108_v4, %v3673_v56  ;;  %v1300_v4 = vld [vmem:[%s4190_s15 + $0x60] sm:$0xff] }
 0xd88   :  { %v3811_v6 = vadd.f32 %v2757_v1, %v1118_v2 }
 0xd89   :  { %v3813_v7 = vadd.f32 %v2757_v1, %v1117_v5  ;;  %v1299_v1 = vld [vmem:[%s4190_s15 + $0x58] sm:$0xff]  ;;  %v1301_v5 = vld [vmem:[%s4190_s15 + $0x68] sm:$0xff] }
 0xd8a   :  { %v1133_v58 = vsel %vm207_vm5, %v3811_v6, 0.0  ;;  %v1139_v56 = vmul.f32 %v3811_v6, %v3811_v6  ;;  %v3250_v2 = vpack.c.bf16 %v1299_v1, %v1298_v63 }
 0xd8b   :  { %1134 = vadd.xlane.f32.xlu1 %v1133_v58  ;;  %v1130_v8 = vsel %vm203_vm4, %v3813_v7, 0.0  ;;  %v1138_v9 = vmul.f32 %v3813_v7, %v3813_v7  ;;  %v3254_v58 = vpack.c.bf16 %v1301_v5, %v1300_v4 }
 0xd8c   :  { %1131 = vadd.xlane.f32.xlu0 %v1130_v8  ;;  %v1143_v10 = vsel %vm207_vm5, %v1139_v56, 0.0  ;;  %v1302_v8 = vld [vmem:[%s4190_s15 + $0x70] sm:$0xff]  ;;  %v2760_v56 = vld [vmem:[%s4189_s14] ss:$0 sm:$0xff] }
 0xd8d   :  { %v1140_v55 = vsel %vm203_vm4, %v1138_v9, 0.0  ;;  %v1303_v9 = vld [vmem:[%s4190_s15 + $0x78] sm:$0xff] }
 0xd90   :  { %1141 = vadd.xlane.f32.xlu0 %v1140_v55  ;;  %v3258_v55 = vpack.c.bf16 %v1303_v9, %v1302_v8 }
 0xd94   :  { %1144 = vadd.xlane.f32.xlu0 %v1143_v10 }
 0xe18   :  { %v1135_v19 = vpop.xlane.xlu1 %1134 }
 0xe19   :  { %v1132_v17 = vpop.xlane.xlu0 %1131  ;;  %v1137_v21 = vmul.f32 0.03125, %v1135_v19 }
 0xe1a   :  { %v1136_v18 = vmul.f32 0.03125, %v1132_v17 }
 0xe1b   :  { %v1149_v26 = vmul.f32 %v1137_v21, %v1137_v21  ;;  %v1155_v39 = vsub.f32 %v3811_v6, %v1137_v21 }
 0xe1c   :  { %v1148_v22 = vmul.f32 %v1136_v18, %v1136_v18  ;;  %v1154_v33 = vsub.f32 %v3813_v7, %v1136_v18 }
 0xe1d   :  { %v1142_v20 = vpop.xlane.xlu0 %1141 }
 0xe1e   :  { %v1146_v23 = vmul.f32 0.03125, %v1142_v20 }
 0xe20   :  { %v1150_v24 = vsub.f32 %v1146_v23, %v1148_v22 }
 0xe21   :  { %v1145_v25 = vpop.xlane.xlu0 %1144 }
 0xe22   :  { %v1152_v27 = vmax.f32 %v1150_v24, 0.0  ;;  %v1147_v28 = vmul.f32 0.03125, %v1145_v25 }
 0xe24   :  { %v1156_v29 = vadd.f32 1e-05, %v1152_v27  ;;  %v1151_v30 = vsub.f32 %v1147_v28, %v1149_v26 }
 0xe26   :  { %3355 = vrsqrt.f32 %v1156_v29  ;;  %v1153_v31 = vmax.f32 %v1151_v30, 0.0 }
 0xe28   :  { %v1157_v32 = vadd.f32 1e-05, %v1153_v31 }
 0xe2a   :  { %3357 = vrsqrt.f32 %v1157_v32 }
 0xe30   :  { %v3356_v35 = vpop.eup %3355 }
 0xe31   :  { %v1160_v37 = vmul.f32 %v3356_v35, %v1154_v33  ;;  %v2763_v33 = vld [vmem:[%s4191_s16] ss:$0 sm:$0xff] }
 0xe33   :  { %v1168_v40 = vmul.f32 %v2758_v36, %v1160_v37 }
 0xe34   :  { %v3358_v41 = vpop.eup %3357 }
 0xe35   :  { %v1161_v42 = vmul.f32 %v3358_v41, %v1155_v39  ;;  %v1176_v43 = vadd.f32 %v2759_v38, %v1168_v40 }
 0xe37   :  { %v1169_v44 = vmul.f32 %v2758_v36, %v1161_v42  ;;  %3013 = vmatprep.mubr.msk.f32.mxu1 %vm203_vm4, %v1176_v43 }
 0xe39   :  { %v1177_v45 = vadd.f32 %v2759_v38, %v1169_v44  ;;  %v2768_v44 = vld [vmem:[%s4182_s7 + $0x20] sm:$0xff] }
 0xe3b   :  { %3014 = vmatmul.mubr.msk.f32.vlgmr.msra.gmra.mrb[20].mxu1 %vm203_vm4, %v1177_v45  ;;  %v2769_v45 = vld [vmem:[%s4182_s7 + $0x28] sm:$0xff] }
 0xe3c   :  { %3233 = vmatpush3.bf16.msra.mxu1 %v3230_v48  ;;  %v3262_v47 = vpack.c.bf16 %v2769_v45, %v2768_v44  ;;  %v2771_v48 = vld [vmem:[%s4182_s7 + $0x38] sm:$0xff] }
 0xe3d   :  { %3235 = vmatprep.subr.bf16.mxu1 %v3234_v51  ;;  %v3266_v49 = vpack.c.bf16 %v2771_v48, %v2770_v46 }
 0xe3e   :  { %3263 = vmatprep.subr.bf16.mxu0 %v3262_v47 }
 0xe3f   :  { %3265 = vmatpush3.bf16.msra.mxu0 %v3262_v47 }
 0xe40   :  { %3237 = vmatpush3.bf16.msra.mxu1 %v3234_v51  ;;  %3267 = vmatprep.subr.bf16.mxu0 %v3266_v49 }
 0xe41   :  { %3239 = vmatprep.subr.bf16.mxu1 %v3238_v54 }
 0xe43   :  { %3269 = vmatpush3.bf16.msra.mxu0 %v3266_v49 }
 0xe44   :  { %3241 = vmatpush3.bf16.msra.mxu1 %v3238_v54  ;;  %3067 = vmatprep.subr.mxu0 %v3442_v34 }
 0xe45   :  { %3243 = vmatprep.subr.bf16.mxu1 %v3242_v60 }
 0xe48   :  { %3245 = vmatpush3.bf16.msra.mxu1 %v3242_v60 }
 0xe49   :  { %3247 = vmatprep.subr.bf16.mxu1 %v3246_v0 }
 0xe4c   :  { %3249 = vmatpush3.bf16.msra.mxu1 %v3246_v0 }
 0xe4d   :  { %3251 = vmatprep.subr.bf16.mxu1 %v3250_v2 }
 0xe50   :  { %3253 = vmatpush3.bf16.msra.mxu1 %v3250_v2 }
 0xe51   :  { %3255 = vmatprep.subr.bf16.mxu1 %v3254_v58 }
 0xe54   :  { %3257 = vmatpush3.bf16.msra.mxu1 %v3254_v58 }
 0xe55   :  { %3259 = vmatprep.subr.bf16.mxu1 %v3258_v55 }
 0xe58   :  { %3261 = vmatpush3.bf16.msra.mxu1 %v3258_v55  ;;  %v2766_v55 = vld [vmem:[%s4221_s0 + $0x1] ss:$0 sm:$0xff] }
 0xe59   :  { %3062 = vmatprep.subr.mxu1 %v3442_v34 }
 0xf0e   :  { %v3015_v10 = vpop.f32.mrb[20].mxu1 }
 0xf0f   :  { %v1267_v11 = vadd.f32 %v3015_v10, %v2760_v56  ;;  %v1261_v12 = vpop.f32.mrb[21].mxu1 }
 0xf10   :  { %v1262_v13 = vadd.f32 %v2760_v56, %v1261_v12  ;;  %v2767_v12 = vld [vmem:[%s4222_s5 + $0x1] ss:$0 sm:$0xff]  ;;  %s4224_s5 = smov 48  }
 0xf11   :  { %v1271_v14 = vmul.f32 %v1267_v11, %v1267_v11 }
 0xf12   :  { %v1270_v15 = vmul.f32 %v1262_v13, %v1262_v13 }
 0xf13   :  { %v1273_v16 = vmul.f32 %v1271_v14, %v1267_v11 }
 0xf14   :  { %v1272_v17 = vmul.f32 %v1270_v15, %v1262_v13 }
 0xf15   :  { %v1275_v18 = vmul.f32 0.044715, %v1273_v16 }
 0xf16   :  { %v1274_v19 = vmul.f32 0.044715, %v1272_v17  ;;  %v2773_v17 = vld [vmem:[%s4183_s8 + $0x1] ss:$0 sm:$0xff]  ;;  %s4223_s8 = smov 112  }
 0xf17   :  { %v1277_v20 = vadd.f32 %v1275_v18, %v1267_v11 }
 0xf18   :  { %v1276_v21 = vadd.f32 %v1274_v19, %v1262_v13 }
 0xf19   :  { %v1279_v22 = vmul.f32 0.7978846, %v1277_v20 }
 0xf1a   :  { %v1278_v23 = vmul.f32 0.7978846, %v1276_v21 }
 0xf1b   :  { %3359 = vtanh.f32 %v1279_v22 }
 0xf1c   :  { %3361 = vtanh.f32 %v1278_v23 }
 0xf25   :  { %v3360_v24 = vpop.eup %3359 }
 0xf26   :  { %v3362_v25 = vpop.eup %3361  ;;  %v1283_v26 = vadd.f32 1.0, %v3360_v24 }
 0xf27   :  { %v1282_v27 = vadd.f32 1.0, %v3362_v25 }
 0xf28   :  { %v1285_v28 = vmul.f32 0.5, %v1283_v26 }
 0xf29   :  { %v1284_v29 = vmul.f32 0.5, %v1282_v27 }
 0xf2a   :  { %v1287_v31 = vmul.f32 %v1285_v28, %v1267_v11 }
 0xf2b   :  { %v1286_v30 = vmul.f32 %v1284_v29, %v1262_v13 }
 0xf2d   :  { %3048 = vmatprep.mubr.f32.mxu1 %v1286_v30 }
 0xf2e   :  { %3049 = vmatmul.mubr.f32.vlgmr.msra.gmra.mrb[22].mxu1 %v1287_v31 }
 0xf2f   :  { %3064 = vmatprep.mubr.msk.f32.mxu1 %vm3443_vm6, %v3442_v34 }
0x1001   :  { %v3050_v32 = vpop.f32.mrb[22].mxu1 }
0x1002   :  { %v1380_v35 = vadd.f32 %v3050_v32, %v3811_v6  ;;  %v1370_v36 = vpop.f32.mrb[23].mxu1 }
0x1003   :  { %v1379_v37 = vadd.f32 %v1370_v36, %v3813_v7 }
0x1004   :  { %v3906_v38 = vadd.f32 %v2763_v33, %v1380_v35 }
0x1005   :  { %v3908_v39 = vadd.f32 %v2763_v33, %v1379_v37 }
0x1006   :  { %v1397_v40 = vsel %vm207_vm5, %v3906_v38, 0.0  ;;  %v1403_v41 = vmul.f32 %v3906_v38, %v3906_v38 }
0x1007   :  { %1398 = vadd.xlane.f32.xlu1 %v1397_v40  ;;  %v1394_v42 = vsel %vm203_vm4, %v3908_v39, 0.0  ;;  %v1402_v6 = vmul.f32 %v3908_v39, %v3908_v39 }
0x1008   :  { %1395 = vadd.xlane.f32.xlu0 %v1394_v42  ;;  %v1407_v7 = vsel %vm207_vm5, %v1403_v41, 0.0 }
0x1009   :  { %v1404_v43 = vsel %vm203_vm4, %v1402_v6, 0.0 }
0x100b   :  { %1408 = vadd.xlane.f32.xlu1 %v1407_v7 }
0x100c   :  { %1405 = vadd.xlane.f32.xlu0 %v1404_v43 }
0x1094   :  { %v1399_v50 = vpop.xlane.xlu1 %1398 }
0x1095   :  { %v1401_v51 = vmul.f32 0.03125, %v1399_v50  ;;  %v1396_v52 = vpop.xlane.xlu0 %1395 }
0x1096   :  { %v1400_v53 = vmul.f32 0.03125, %v1396_v52 }
0x1097   :  { %v1413_v57 = vmul.f32 %v1401_v51, %v1401_v51  ;;  %v1419_v58 = vsub.f32 %v3906_v38, %v1401_v51 }
0x1098   :  { %v1409_v54 = vpop.xlane.xlu1 %1408  ;;  %v1412_v61 = vmul.f32 %v1400_v53, %v1400_v53  ;;  %v1418_v9 = vsub.f32 %v3908_v39, %v1400_v53 }
0x1099   :  { %v1411_v59 = vmul.f32 0.03125, %v1409_v54  ;;  %v1406_v60 = vpop.xlane.xlu0 %1405 }
0x109a   :  { %v1410_v62 = vmul.f32 0.03125, %v1406_v60 }
0x109b   :  { %v1415_v63 = vsub.f32 %v1411_v59, %v1413_v57 }
0x109c   :  { %v1414_v0 = vsub.f32 %v1410_v62, %v1412_v61 }
0x109d   :  { %v1417_v1 = vmax.f32 %v1415_v63, 0.0 }
0x109e   :  { %v1416_v2 = vmax.f32 %v1414_v0, 0.0 }
0x109f   :  { %v1421_v4 = vadd.f32 1e-05, %v1417_v1 }
0x10a0   :  { %v1420_v5 = vadd.f32 1e-05, %v1416_v2 }
0x10a1   :  { %3363 = vrsqrt.f32 %v1421_v4 }
0x10a2   :  { %3365 = vrsqrt.f32 %v1420_v5 }
0x10ab   :  { %v3364_v8 = vpop.eup %3363 }
0x10ac   :  { %v3366_v56 = vpop.eup %3365  ;;  %v1425_v10 = vmul.f32 %v3364_v8, %v1419_v58 }
0x10ad   :  { %v1424_v11 = vmul.f32 %v3366_v56, %v1418_v9 }
0x10ae   :  { %v1433_v13 = vmul.f32 %v2766_v55, %v1425_v10 }
0x10af   :  { %v1432_v14 = vmul.f32 %v2766_v55, %v1424_v11 }
0x10b0   :  { %v1441_v16 = vadd.f32 %v2767_v12, %v1433_v13 }
0x10b1   :  { %v1440_v15 = vadd.f32 %v2767_v12, %v1432_v14 }
0x10b3   :  { %3059 = vmatprep.mubr.msk.f32.mxu0 %vm203_vm4, %v1440_v15 }
0x10b4   :  { %3060 = vmatmul.mubr.msk.f32.vlgmr.msra.gmra.mrb[2].mxu0 %vm203_vm4, %v1441_v16 }
0x10b5   :  { %3069 = vmatprep.mubr.msk.f32.mxu0 %vm3443_vm6, %v3442_v34 }
0x1187   :  { %v3061_v18 = vpop.f32.mrb[2].mxu0 }
0x1188   :  { %v1533_v19 = vadd.f32 %v3061_v18, %v2773_v17  ;;  %v1527_v20 = vpop.f32.mrb[3].mxu0 }
0x1189   :  { %v1528_v21 = vadd.f32 %v2773_v17, %v1527_v20 }
0x118a   :  { %v1876_v33 = vrot.slane %v1533_v19, 5 }
0x118b   :  { %1537 = vrot.lane.b32.xlu0 %v1528_v21, %s3444_s25  ;;  %v1875_v35 = vrot.slane %v1528_v21, 5 }
0x118d   :  { %v3962_v36 = vsel %vm688_vm10, %v1875_v35, %v1876_v33 }
0x118f   :  { %1704 = vrot.lane.b32.xlu0 %v1528_v21, %s3445_s26 }
0x11fd   :  { %v1538_v22 = vpop.permute.xlu0 %1537 }
0x11fe   :  { %3063 = vmatpush3.xpose.msk.msra.mxu1 %vm349_vm7, %v1538_v22 }
0x11ff   :  { %3087 = vmatprep.subr.mxu1 %v3442_v34 }
0x1201   :  { %3065 = vmatmul.mubr.msk.f32.vlgmr.msra.gmra.mrb[24].mxu1 %vm349_vm7, %v1528_v21  ;;  %v1705_v42 = vpop.permute.xlu0 %1704 }
0x1202   :  { %3089 = vmatprep.mubr.msk.f32.mxu1 %vm3443_vm6, %v3442_v34 }
0x12d4   :  { %v1609_v23 = vpop.f32.mrb[24].mxu1 }
0x12d5   :  { %v1613_v24 = vmul.f32 0.25, %v1609_v23  ;;  %v3066_v25 = vpop.f32.mrb[25].mxu1 }
0x12d7   :  { %v1614_v26 = vsel %vm425_vm8, %v1613_v24, -inf }
0x12d8   :  { %1615 = vmax.xlane.f32.xlu1 %v1614_v26 }
0x12e9   :  { %1625 = vrot.lane.b32.xlu1 %v1528_v21, %s3446_s2 }
0x1365   :  { %v1616_v27 = vpop.xlane.xlu1 %1615 }
0x1366   :  { %v1617_v28 = vsub.f32 %v1613_v24, %v1616_v27  ;;  %v2792_v27 = vld [vmem:[%s4184_s9 + $0x20] sm:$0xff] }
0x1368   :  { %v1618_v29 = vmul.f32 1.442695, %v1617_v28  ;;  %v2793_v28 = vld [vmem:[%s4184_s9 + $0x28] sm:$0xff] }
0x1369   :  { %v1626_v30 = vpop.permute.xlu1 %1625 }
0x136a   :  { %3367 = vpow2.f32 %v1618_v29  ;;  %3068 = vmatpush3.msk.msra.mxu0 %vm193_vm2, %v1626_v30  ;;  %v3270_v29 = vpack.c.bf16 %v2793_v28, %v2792_v27  ;;  %v2794_v30 = vld [vmem:[%s4184_s9 + $0x30] sm:$0xff]  ;;  %v2812_v28 = vld [vmem:[%s4190_s15 + $0x80] sm:$0xff] }
0x136b   :  { %3072 = vmatprep.subr.mxu0 %v3442_v34 }
0x1374   :  { %v3368_v31 = vpop.eup %3367 }
0x1375   :  { %v1620_v32 = vsel %vm425_vm8, %v3368_v31, 0.0 }
0x1376   :  { %1621 = vadd.xlane.f32.xlu1 %v1620_v32 }
0x1387   :  { %1702 = vrot.lane.b32.xlu1 %v1528_v21, %s4223_s8 }
0x138b   :  { %1878 = vrot.lane.b32.xlu1 %v3962_v36, %s3444_s25 }
0x1403   :  { %v1622_v37 = vpop.xlane.xlu1 %1621 }
0x1404   :  { %3369 = vrcp.f32 %v1622_v37 }
0x1407   :  { %v1703_v6 = vpop.permute.xlu1 %1702 }
0x140b   :  { %v1879_v54 = vpop.permute.xlu1 %1878 }
0x140e   :  { %v3370_v40 = vpop.eup %3369 }
0x140f   :  { %v1624_v41 = vmul.f32 %v3370_v40, %v3368_v31  ;;  %v2795_v31 = vld [vmem:[%s4184_s9 + $0x38] sm:$0xff] }
0x1410   :  { %v3274_v32 = vpack.c.bf16 %v2795_v31, %v2794_v30  ;;  %v2814_v31 = vld [vmem:[%s4190_s15 + $0x90] sm:$0xff] }
0x1411   :  { %3070 = vmatmul.mubr.msk.f32.vlgmr.msra.gmra.mrb[4].mxu0 %vm439_vm9, %v1624_v41 }
0x1412   :  { %3073 = vmatpush3.xpose.msk.msra.mxu0 %vm349_vm7, %v1705_v42  ;;  %3074 = vmatprep.mubr.msk.f32.mxu0 %vm3443_vm6, %v3442_v34 }
0x1413   :  { %3077 = vmatprep.subr.mxu0 %v3442_v34 }
0x1415   :  { %3075 = vmatmul.mubr.msk.f32.vlgmr.msra.gmra.mrb[6].mxu0 %vm349_vm7, %v1703_v6 }
0x1416   :  { %3079 = vmatprep.mubr.msk.f32.mxu0 %vm3443_vm6, %v3442_v34 }
0x14e4   :  { %v3974_v7 = vpop.f32.mrb[4].mxu0 }
0x14e5   :  { %v3071_v43 = vpop.f32.mrb[5].mxu0 }
0x14e8   :  { %v1776_v44 = vpop.f32.mrb[6].mxu0 }
0x14e9   :  { %v1780_v45 = vmul.f32 0.25, %v1776_v44  ;;  %v3076_v46 = vpop.f32.mrb[7].mxu0 }
0x14ea   :  { %v2799_v46 = vld [vmem:[%s4185_s10 + $0x1] ss:$0 sm:$0xff] }
0x14eb   :  { %v1781_v47 = vsel %vm425_vm8, %v1780_v45, -inf }
0x14ec   :  { %1782 = vmax.xlane.f32.xlu0 %v1781_v47 }
0x1502   :  { %1792 = vrot.lane.b32.xlu0 %v1528_v21, %s4224_s5 }
0x1506   :  { %2045 = vrot.lane.b32.xlu0 %v3962_v36, %s3445_s26 }
0x1579   :  { %v1783_v48 = vpop.xlane.xlu0 %1782 }
0x157a   :  { %v1784_v49 = vsub.f32 %v1780_v45, %v1783_v48 }
0x157c   :  { %v1785_v50 = vmul.f32 1.442695, %v1784_v49 }
0x157d   :  { %v1793_v51 = vpop.permute.xlu0 %1792 }
0x157e   :  { %3371 = vpow2.f32 %v1785_v50  ;;  %3078 = vmatpush3.msk.msra.mxu0 %vm193_vm2, %v1793_v51 }
0x157f   :  { %3082 = vmatprep.subr.mxu0 %v3442_v34 }
0x1581   :  { %v2046_v61 = vpop.permute.xlu0 %2045 }
0x1588   :  { %v3372_v52 = vpop.eup %3371 }
0x1589   :  { %v1787_v53 = vsel %vm425_vm8, %v3372_v52, 0.0 }
0x158a   :  { %1788 = vadd.xlane.f32.xlu1 %v1787_v53 }
0x159b   :  { %2043 = vrot.lane.b32.xlu1 %v3962_v36, %s4223_s8 }
0x1617   :  { %v1789_v57 = vpop.xlane.xlu1 %1788 }
0x1618   :  { %3373 = vrcp.f32 %v1789_v57 }
0x161b   :  { %v2044_v62 = vpop.permute.xlu1 %2043 }
0x1622   :  { %v3374_v59 = vpop.eup %3373 }
0x1623   :  { %v1791_v60 = vmul.f32 %v3374_v59, %v3372_v52  ;;  %v2805_v59 = vld [vmem:[%s4188_s13 + $0x28] sm:$0xff] }
0x1625   :  { %3080 = vmatmul.mubr.msk.f32.vlgmr.msra.gmra.mrb[8].mxu0 %vm439_vm9, %v1791_v60  ;;  %v2806_v60 = vld [vmem:[%s4188_s13 + $0x30] sm:$0xff] }
0x1626   :  { %3083 = vmatpush3.xpose.msk.msra.mxu0 %vm349_vm7, %v1879_v54  ;;  %3084 = vmatprep.mubr.msk.f32.mxu0 %vm3443_vm6, %v3442_v34 }
0x1627   :  { %3092 = vmatprep.subr.mxu0 %v3442_v34 }
0x1629   :  { %3085 = vmatmul.mubr.msk.f32.vlgmr.msra.gmra.mrb[10].mxu0 %vm349_vm7, %v3962_v36 }
0x162a   :  { %3093 = vmatpush3.xpose.msk.msra.mxu0 %vm349_vm7, %v2046_v61  ;;  %3094 = vmatprep.mubr.msk.f32.mxu0 %vm3443_vm6, %v3442_v34 }
0x162b   :  { %3271 = vmatprep.subr.bf16.mxu0 %v3270_v29 }
0x162d   :  { %3095 = vmatmul.mubr.msk.f32.vlgmr.msra.gmra.mrb[12].mxu0 %vm349_vm7, %v2044_v62  ;;  %v2807_v62 = vld [vmem:[%s4188_s13 + $0x38] sm:$0xff] }
0x162e   :  { %3273 = vmatpush3.bf16.msra.mxu0 %v3270_v29  ;;  %v2813_v29 = vld [vmem:[%s4190_s15 + $0x88] sm:$0xff] }
0x162f   :  { %3275 = vmatprep.subr.bf16.mxu0 %v3274_v32  ;;  %v3286_v30 = vpack.c.bf16 %v2813_v29, %v2812_v28 }
0x1632   :  { %3277 = vmatpush3.bf16.msra.mxu0 %v3274_v32  ;;  %v2815_v32 = vld [vmem:[%s4190_s15 + $0x98] sm:$0xff] }
0x1633   :  { %3287 = vmatprep.subr.bf16.mxu0 %v3286_v30 }
0x16f8   :  { %v1865_v63 = vpop.f32.mrb[8].mxu0 }
0x16f9   :  { %v3081_v0 = vpop.f32.mrb[9].mxu0 }
0x16fc   :  { %v1950_v1 = vpop.f32.mrb[10].mxu0 }
0x16fd   :  { %v1954_v2 = vmul.f32 0.25, %v1950_v1  ;;  %v3086_v4 = vpop.f32.mrb[11].mxu0 }
0x16ff   :  { %v1955_v5 = vsel %vm425_vm8, %v1954_v2, -inf }
0x1700   :  { %1956 = vmax.xlane.f32.xlu0 %v1955_v5  ;;  %v2117_v58 = vpop.f32.mrb[12].mxu0 }
0x1701   :  { %v2121_v8 = vmul.f32 0.25, %v2117_v58  ;;  %v3096_v9 = vpop.f32.mrb[13].mxu0 }
0x1703   :  { %v2122_v55 = vsel %vm425_vm8, %v2121_v8, -inf }
0x1704   :  { %2123 = vmax.xlane.f32.xlu1 %v2122_v55 }
0x1715   :  { %2133 = vrot.lane.b32.xlu1 %v3962_v36, %s4224_s5 }
0x178d   :  { %v1957_v56 = vpop.xlane.xlu0 %1956 }
0x178e   :  { %v1958_v10 = vsub.f32 %v1954_v2, %v1957_v56 }
0x1790   :  { %v1959_v11 = vmul.f32 1.442695, %v1958_v10 }
0x1791   :  { %v2124_v12 = vpop.xlane.xlu1 %2123 }
0x1792   :  { %3375 = vpow2.f32 %v1959_v11  ;;  %v2125_v13 = vsub.f32 %v2121_v8, %v2124_v12 }
0x1794   :  { %v2126_v14 = vmul.f32 1.442695, %v2125_v13 }
0x1795   :  { %v2134_v24 = vpop.permute.xlu1 %2133 }
0x1796   :  { %3377 = vpow2.f32 %v2126_v14 }
0x179c   :  { %v3376_v15 = vpop.eup %3375 }
0x179d   :  { %v1961_v16 = vsel %vm425_vm8, %v3376_v15, 0.0 }
0x179e   :  { %1962 = vadd.xlane.f32.xlu0 %v1961_v16 }
0x17a0   :  { %v3378_v17 = vpop.eup %3377 }
0x17a1   :  { %v2128_v18 = vsel %vm425_vm8, %v3378_v17, 0.0 }
0x17a2   :  { %2129 = vadd.xlane.f32.xlu0 %v2128_v18  ;;  %v2802_v18 = vld [vmem:[%s4186_s11 + $0x1] ss:$0 sm:$0xff]  ;;  %s3450_s11 = smov [#allocation4]  }
0x17a3   :  { %s2720_s27 = sshll.u32 %s3450_s11, 4  ;;  %s2721_s27 = int_to_ptr.vmem [resolvable:$true] %s2720_s27 }
0x17a4   :  { %s3393_s6 = scalar_lea.vmem %s2721_s27, 32  ;;  %p3398_p1 = scmp.lt.s32.totalorder %s2721_s27, %s2721_s27 }
0x17a5   :  { %p3394_p0 = scmp.ne.s32.totalorder %s2721_s27, %s3393_s6  ;;  %p3399_p2 = scmp.lt.s32.totalorder %s3393_s6, %s3393_s6 }
0x17a7   :  { %p3400_p3 = por %p3399_p2, %p3398_p1 }
0x17a9   :  { %p3401_p4 = pnand %p3400_p3, %p3394_p0 }
0x17b8   :  { %1966 = vrot.lane.b32.xlu0 %v3962_v36, %s3446_s2 }
0x182b   :  { %v1963_v19 = vpop.xlane.xlu0 %1962 }
0x182c   :  { %3379 = vrcp.f32 %v1963_v19 }
0x182f   :  { %v2130_v20 = vpop.xlane.xlu0 %2129 }
0x1830   :  { %3381 = vrcp.f32 %v2130_v20  ;;  %v2803_v20 = vld [vmem:[%s4187_s12 + $0x1] ss:$0 sm:$0xff] }
0x1833   :  { %v1967_v21 = vpop.permute.xlu0 %1966 }
0x1834   :  { %3088 = vmatpush3.msk.msra.mxu1 %vm193_vm2, %v1967_v21 }
0x1835   :  { %3097 = vmatprep.subr.mxu1 %v3442_v34 }
0x1836   :  { %v3380_v22 = vpop.eup %3379 }
0x1837   :  { %v1965_v23 = vmul.f32 %v3380_v22, %v3376_v15 }
0x1839   :  { %3090 = vmatmul.mubr.msk.f32.vlgmr.msra.gmra.mrb[26].mxu1 %vm439_vm9, %v1965_v23 }
0x183a   :  { %v3382_v25 = vpop.eup %3381  ;;  %3098 = vmatpush3.msk.msra.mxu1 %vm193_vm2, %v2134_v24  ;;  %3099 = vmatprep.mubr.msk.f32.mxu1 %vm3443_vm6, %v3442_v34 }
0x183b   :  { %v2132_v26 = vmul.f32 %v3382_v25, %v3378_v17 }
0x183d   :  { %3100 = vmatmul.mubr.msk.f32.vlgmr.msra.gmra.mrb[28].mxu1 %vm439_vm9, %v2132_v26 }
0x190c   :  { %v2039_v33 = vpop.f32.mrb[26].mxu1 }
0x190d   :  { %v3091_v35 = vpop.f32.mrb[27].mxu1 }
0x190e   :  { %v2817_v35 = vld [vmem:[%s4190_s15 + $0xa8] sm:$0xff] }
0x1910   :  { %v2206_v36 = vpop.f32.mrb[28].mxu1 }
0x1911   :  { %2211 = vrot.lane.b32.xlu1 %v2206_v36, %s4225_s29  ;;  %v3101_v37 = vpop.f32.mrb[29].mxu1 }
0x1912   :  { %v2818_v37 = vld [vmem:[%s4190_s15 + $0xb0] sm:$0xff] }
0x1915   :  { %1870 = vrot.lane.b32.xlu1 %v1865_v63, %s4225_s29  ;;  %v3282_v63 = vpack.c.bf16 %v2807_v62, %v2806_v60 }
0x1983   :  { %v2212_v40 = vpop.permute.xlu1 %2211 }
0x1984   :  { %v2214_v41 = vsel %vm349_vm7, %v2039_v33, %v2212_v40  ;;  %v2816_v33 = vld [vmem:[%s4190_s15 + $0xa0] sm:$0xff]  ;;  %v2819_v40 = vld [vmem:[%s4190_s15 + $0xb8] sm:$0xff] }
0x1985   :  { %v2216_v42 = vrot.slane %v2214_v41, 3  ;;  %v3294_v36 = vpack.c.bf16 %v2817_v35, %v2816_v33  ;;  %v3298_v41 = vpack.c.bf16 %v2819_v40, %v2818_v37 }
0x1987   :  { %v1871_v6 = vpop.permute.xlu1 %1870 }
0x1988   :  { %v1873_v43 = vsel %vm349_vm7, %v3974_v7, %v1871_v6  ;;  %v2821_v6 = vld [vmem:[%s4190_s15 + $0xc8] sm:$0xff] }
0x1989   :  { %v2218_v44 = vsel %vm193_vm2, %v1873_v43, %v2216_v42  ;;  %v2822_v43 = vld [vmem:[%s4190_s15 + $0xd0] sm:$0xff] }
0x198a   :  { %3110 = vmatprep.mubr.msk.f32.mxu0 %vm203_vm4, %v2218_v44 }
0x198b   :  { %3111 = vmatmul.mubr.msk.f32.vlgmr.msra.gmra.mrb[14].mxu0 %vm203_vm4, %v2216_v42  ;;  %v2820_v42 = vld [vmem:[%s4190_s15 + $0xc0] sm:$0xff] }
0x198c   :  { %3289 = vmatpush3.bf16.msra.mxu0 %v3286_v30  ;;  %v3302_v44 = vpack.c.bf16 %v2821_v6, %v2820_v42 }
0x1a5e   :  { %v3112_v45 = vpop.f32.mrb[14].mxu0 }
0x1a5f   :  { %v2305_v47 = vadd.f32 %v3112_v45, %v3906_v38  ;;  %v2295_v48 = vpop.f32.mrb[15].mxu0  ;;  %v2823_v45 = vld [vmem:[%s4190_s15 + $0xd8] sm:$0xff] }
0x1a60   :  { %v2304_v49 = vadd.f32 %v2295_v48, %v3908_v39  ;;  %v2804_v39 = vld [vmem:[%s4188_s13 + $0x20] sm:$0xff]  ;;  %v2825_v48 = vld [vmem:[%s4190_s15 + $0xe8] sm:$0xff] }
0x1a61   :  { %v2315_v50 = vadd.f32 %v2799_v46, %v2305_v47  ;;  %v3278_v61 = vpack.c.bf16 %v2805_v59, %v2804_v39  ;;  %v2824_v47 = vld [vmem:[%s4190_s15 + $0xe0] sm:$0xff] }
0x1a62   :  { %v4036_v51 = vadd.f32 %v2799_v46, %v2304_v49  ;;  %v3306_v46 = vpack.c.bf16 %v2823_v45, %v2822_v43  ;;  %v3310_v49 = vpack.c.bf16 %v2825_v48, %v2824_v47 }
0x1a63   :  { %v2323_v7 = vsel %vm207_vm5, %v2315_v50, 0.0  ;;  %v2329_v57 = vmul.f32 %v2315_v50, %v2315_v50  ;;  %3279 = vmatprep.subr.bf16.mxu1 %v3278_v61 }
0x1a64   :  { %2324 = vadd.xlane.f32.xlu1 %v2323_v7  ;;  %v2320_v52 = vsel %vm203_vm4, %v4036_v51, 0.0  ;;  %v2328_v53 = vmul.f32 %v4036_v51, %v4036_v51  ;;  %3281 = vmatpush3.bf16.msra.mxu1 %v3278_v61  ;;  %v2827_v7 = vld [vmem:[%s4190_s15 + $0xf8] sm:$0xff] }
0x1a65   :  { %2321 = vadd.xlane.f32.xlu0 %v2320_v52  ;;  %v2333_v38 = vsel %vm207_vm5, %v2329_v57, 0.0  ;;  %3283 = vmatprep.subr.bf16.mxu1 %v3282_v63 }
0x1a66   :  { %v2330_v54 = vsel %vm203_vm4, %v2328_v53, 0.0  ;;  %v2809_v53 = vld [vmem:[%s4189_s14 + $0x1] ss:$0 sm:$0xff] }
0x1a68   :  { %3285 = vmatpush3.bf16.msra.mxu1 %v3282_v63 }
0x1a69   :  { %2331 = vadd.xlane.f32.xlu0 %v2330_v54  ;;  %3318 = vmatprep.subr.bf16.mxu1 %v3441_v3 }
0x1a6d   :  { %2334 = vadd.xlane.f32.xlu0 %v2333_v38 }
0x1af1   :  { %v2325_v2 = vpop.xlane.xlu1 %2324 }
0x1af2   :  { %v2322_v0 = vpop.xlane.xlu0 %2321  ;;  %v2327_v5 = vmul.f32 0.03125, %v2325_v2 }
0x1af3   :  { %v2326_v1 = vmul.f32 0.03125, %v2322_v0 }
0x1af4   :  { %v2339_v56 = vmul.f32 %v2327_v5, %v2327_v5  ;;  %v2345_v21 = vsub.f32 %v2315_v50, %v2327_v5  ;;  %v2826_v50 = vld [vmem:[%s4190_s15 + $0xf0] sm:$0xff] }
0x1af5   :  { %v2338_v58 = vmul.f32 %v2326_v1, %v2326_v1  ;;  %v2344_v16 = vsub.f32 %v4036_v51, %v2326_v1  ;;  %v3314_v52 = vpack.c.bf16 %v2827_v7, %v2826_v50 }
0x1af6   :  { %v2332_v4 = vpop.xlane.xlu0 %2331 }
0x1af7   :  { %v2336_v8 = vmul.f32 0.03125, %v2332_v4 }
0x1af9   :  { %v2340_v9 = vsub.f32 %v2336_v8, %v2338_v58 }
0x1afa   :  { %v2335_v55 = vpop.xlane.xlu0 %2334 }
0x1afb   :  { %v2342_v10 = vmax.f32 %v2340_v9, 0.0  ;;  %v2337_v11 = vmul.f32 0.03125, %v2335_v55 }
0x1afd   :  { %v2346_v12 = vadd.f32 1e-05, %v2342_v10  ;;  %v2341_v13 = vsub.f32 %v2337_v11, %v2339_v56 }
0x1aff   :  { %3383 = vrsqrt.f32 %v2346_v12  ;;  %v2343_v14 = vmax.f32 %v2341_v13, 0.0 }
0x1b01   :  { %v2347_v15 = vadd.f32 1e-05, %v2343_v14 }
0x1b03   :  { %3385 = vrsqrt.f32 %v2347_v15  ;;  %v2829_v15 = vld [vmem:[%s4191_s16 + $0x1] ss:$0 sm:$0xff] }
0x1b09   :  { %v3384_v17 = vpop.eup %3383 }
0x1b0a   :  { %v2350_v19 = vmul.f32 %v3384_v17, %v2344_v16 }
0x1b0c   :  { %v2358_v22 = vmul.f32 %v2802_v18, %v2350_v19 }
0x1b0d   :  { %v3386_v23 = vpop.eup %3385 }
0x1b0e   :  { %v2351_v24 = vmul.f32 %v3386_v23, %v2345_v21  ;;  %v2366_v25 = vadd.f32 %v2803_v20, %v2358_v22  ;;  %v2617_v21 = vld [vmem:[%s4194_s19] sm:$0xff]  ;;  %v2618_v22 = vld [vmem:[%s4194_s19 + $0x8] sm:$0xff] }
0x1b0f   :  { %v3319_v23 = vpack.c.bf16 %v2618_v22, %v2617_v21 }
0x1b10   :  { %v2359_v26 = vmul.f32 %v2802_v18, %v2351_v24  ;;  %3121 = vmatprep.mubr.msk.f32.mxu1 %vm203_vm4, %v2366_v25  ;;  %v2620_v24 = vld [vmem:[%s4194_s19 + $0x18] sm:$0xff] }
0x1b12   :  { %v2367_v27 = vadd.f32 %v2803_v20, %v2359_v26 }
0x1b14   :  { %3122 = vmatmul.mubr.msk.f32.vlgmr.msra.gmra.mrb[30].mxu1 %vm203_vm4, %v2367_v27 }
0x1b15   :  { %3167 = vmatprep.mubr.msk.f32.mxu1 %vm3443_vm6, %v3442_v34  ;;  %v3290_v34 = vpack.c.bf16 %v2815_v32, %v2814_v31  ;;  %3320 = vmatpush3.bf16.msra.mxu1 %v3319_v23 }
0x1b16   :  { %3321 = vmatprep.subr.bf16.mxu1 %v3441_v3  ;;  %v2831_v3 = vld [vmem:[%s4193_s18] ss:$0 sm:$0xff] }
0x1b17   :  { %3291 = vmatprep.subr.bf16.mxu0 %v3290_v34 }
0x1b18   :  { %3293 = vmatpush3.bf16.msra.mxu0 %v3290_v34 }
0x1b19   :  { %3295 = vmatprep.subr.bf16.mxu0 %v3294_v36 }
0x1b1c   :  { %3297 = vmatpush3.bf16.msra.mxu0 %v3294_v36  ;;  %v2830_v36 = vld [vmem:[%s4192_s17] ss:$0 sm:$0xff] }
0x1b1d   :  { %3299 = vmatprep.subr.bf16.mxu0 %v3298_v41 }
0x1b20   :  { %3301 = vmatpush3.bf16.msra.mxu0 %v3298_v41 }
0x1b21   :  { %3303 = vmatprep.subr.bf16.mxu0 %v3302_v44 }
0x1b24   :  { %3305 = vmatpush3.bf16.msra.mxu0 %v3302_v44 }
0x1b25   :  { %3307 = vmatprep.subr.bf16.mxu0 %v3306_v46 }
0x1b28   :  { %3309 = vmatpush3.bf16.msra.mxu0 %v3306_v46 }
0x1b29   :  { %3311 = vmatprep.subr.bf16.mxu0 %v3310_v49 }
0x1b2c   :  { %3313 = vmatpush3.bf16.msra.mxu0 %v3310_v49 }
0x1b2d   :  { %3315 = vmatprep.subr.bf16.mxu0 %v3314_v52 }
0x1b30   :  { %3317 = vmatpush3.bf16.msra.mxu0 %v3314_v52 }
0x1be7   :  { %v3123_v54 = vpop.f32.mrb[30].mxu1 }
0x1be8   :  { %v2459_v57 = vadd.f32 %v3123_v54, %v2809_v53  ;;  %v2453_v38 = vpop.f32.mrb[31].mxu1 }
0x1be9   :  { %v2454_v39 = vadd.f32 %v2809_v53, %v2453_v38 }
0x1bea   :  { %v2463_v59 = vmul.f32 %v2459_v57, %v2459_v57 }
0x1beb   :  { %v2462_v60 = vmul.f32 %v2454_v39, %v2454_v39 }
0x1bec   :  { %v2465_v61 = vmul.f32 %v2463_v59, %v2459_v57 }
0x1bed   :  { %v2464_v62 = vmul.f32 %v2462_v60, %v2454_v39 }
0x1bee   :  { %v2467_v63 = vmul.f32 0.044715, %v2465_v61 }
0x1bef   :  { %v2466_v0 = vmul.f32 0.044715, %v2464_v62 }
0x1bf0   :  { %v2469_v1 = vadd.f32 %v2467_v63, %v2459_v57 }
0x1bf1   :  { %v2468_v2 = vadd.f32 %v2466_v0, %v2454_v39 }
0x1bf2   :  { %v2471_v4 = vmul.f32 0.7978846, %v2469_v1 }
0x1bf3   :  { %v2470_v5 = vmul.f32 0.7978846, %v2468_v2 }
0x1bf4   :  { %3387 = vtanh.f32 %v2471_v4 }
0x1bf5   :  { %3389 = vtanh.f32 %v2470_v5 }
0x1bfe   :  { %v3388_v58 = vpop.eup %3387 }
0x1bff   :  { %v3390_v8 = vpop.eup %3389  ;;  %v2475_v9 = vadd.f32 1.0, %v3388_v58 }
0x1c00   :  { %v2474_v55 = vadd.f32 1.0, %v3390_v8 }
0x1c01   :  { %v2477_v56 = vmul.f32 0.5, %v2475_v9 }
0x1c02   :  { %v2476_v10 = vmul.f32 0.5, %v2474_v55 }
0x1c03   :  { %v2479_v12 = vmul.f32 %v2477_v56, %v2459_v57 }
0x1c04   :  { %v2478_v11 = vmul.f32 %v2476_v10, %v2454_v39 }
0x1c06   :  { %3156 = vmatprep.mubr.f32.mxu0 %v2478_v11 }
0x1c07   :  { %3157 = vmatmul.mubr.f32.vlgmr.msra.gmra.mrb[16].mxu0 %v2479_v12 }
0x1cda   :  { %v3158_v13 = vpop.f32.mrb[16].mxu0 }
0x1cdb   :  { %v2563_v14 = vpop.f32.mrb[17].mxu0 }
0x1cdc   :  { %v2571_v16 = vadd.f32 %v2563_v14, %v4036_v51  ;;  %v2619_v51 = vld [vmem:[%s4194_s19 + $0x10] sm:$0xff] }
0x1cdd   :  { %v3322_v25 = vpack.c.bf16 %v2620_v24, %v2619_v51 }
0x1cde   :  { %v2580_v17 = vadd.f32 %v2829_v15, %v2571_v16 }
0x1cdf   :  { %3323 = vmatpush3.bf16.msra.mxu1 %v3322_v25 }
0x1ce0   :  { %v2583_v18 = vsel %vm203_vm4, %v2580_v17, 0.0  ;;  %v2587_v19 = vmul.f32 %v2580_v17, %v2580_v17 }
0x1ce1   :  { %2584 = vadd.xlane.f32.xlu0 %v2583_v18 }
0x1ce2   :  { %v2588_v20 = vsel %vm203_vm4, %v2587_v19, 0.0 }
0x1ce3   :  { %2589 = vadd.xlane.f32.xlu1 %v2588_v20 }
0x1d6e   :  { %v2585_v26 = vpop.xlane.xlu0 %2584 }
0x1d6f   :  { %v2586_v27 = vmul.f32 0.03125, %v2585_v26 }
0x1d70   :  { %v2590_v28 = vpop.xlane.xlu1 %2589 }
0x1d71   :  { %v2592_v29 = vmul.f32 %v2586_v27, %v2586_v27  ;;  %v2591_v30 = vmul.f32 0.03125, %v2590_v28  ;;  %v2595_v33 = vsub.f32 %v2580_v17, %v2586_v27 }
0x1d73   :  { %v2593_v31 = vsub.f32 %v2591_v30, %v2592_v29 }
0x1d75   :  { %v2594_v32 = vmax.f32 %v2593_v31, 0.0 }
0x1d77   :  { %v2596_v34 = vadd.f32 1e-05, %v2594_v32 }
0x1d79   :  { %3391 = vrsqrt.f32 %v2596_v34 }
0x1d83   :  { %v3392_v35 = vpop.eup %3391 }
0x1d84   :  { %v2598_v37 = vmul.f32 %v3392_v35, %v2595_v33 }
0x1d86   :  { %v2605_v40 = vmul.f32 %v2830_v36, %v2598_v37 }
0x1d88   :  { %v2612_v41 = vadd.f32 %v2831_v3, %v2605_v40 }
0x1d8a   :  { %v2614_v42 = vrot.slane %v2612_v41, 4 }
0x1d8c   :  { %v2616_v6 = vsel %vm191_vm1, %v2612_v41, %v2614_v42 }
0x1d8d   :  { %3168 = vmatmul.mubr.msk.f32.vlgmr.msra.gmra.mrb[32].mxu1 %vm203_vm4, %v2616_v6  ;;  %2701 = vst.msk [vmem:[#allocation4] sm:$0x3] %vm207_vm5, %v2616_v6 }
0x1d8e   :  { %3404 = shalt.err (!%p3401_p4)
}
0x1d8f   :  { %s3405_s12 = scalar_lea.hbm %s4197_s22, 32 }
0x1d90   :  { %p3406_p5 = scmp.ne.s32.totalorder %s4197_s22, %s3405_s12  ;;  %p3409_p6 = scmp.lt.u32.totalorder %s3405_s12, %s4197_s22 }
0x1d92   :  { %p3411_p7 = pnand %p3409_p6, %p3406_p5 }
0x1d94   :  { %3414 = shalt.err (!%p3411_p7)
}
0x1d95   :  { %2723 = dma.vmem_to_hbm [thread:$0]  %s2721_s27, 32, %s4197_s22, [#allocation5]   ;;  %v2832_v43 = vld [vmem:[%s4195_s20] ss:$0 sm:$0xff]  ;;  %vm2702_vm11 = vcmask 123904  }
0x1d96   :  { %s3451_s14 = smov [#allocation2]  }
0x1d97   :  { %s2710_s15 = sshll.u32 %s3451_s14, 4  ;;  %s2711_s15 = int_to_ptr.vmem [resolvable:$true] %s2710_s15 }
0x1d98   :  { %s3415_s1 = scalar_lea.vmem %s2711_s15, 32  ;;  %p3420_p9 = scmp.lt.s32.totalorder %s2711_s15, %s2711_s15 }
0x1d99   :  { %p3416_p8 = scmp.ne.s32.totalorder %s2711_s15, %s3415_s1  ;;  %p3421_p10 = scmp.lt.s32.totalorder %s3415_s1, %s3415_s1 }
0x1d9b   :  { %p3422_p11 = por %p3421_p10, %p3420_p9 }
0x1d9d   :  { %p3423_p12 = pnand %p3422_p11, %p3416_p8 }
0x1e60   :  { %v2697_v44 = vpop.f32.mrb[32].mxu1 }
0x1e61   :  { %v2698_v45 = vadd.f32 %v2832_v43, %v2697_v44  ;;  %v3169_v46 = vpop.f32.mrb[33].mxu1 }
0x1e63   :  { %2703 = vst.msk [vmem:[#allocation2] sm:$0x3] %vm2702_vm11, %v2698_v45 }
0x1e64   :  { %3426 = shalt.err (!%p3423_p12)
}
0x1e65   :  { %s3427_s24 = scalar_lea.hbm %s4196_s21, 32 }
0x1e66   :  { %p3428_p13 = scmp.ne.s32.totalorder %s4196_s21, %s3427_s24  ;;  %p3431_p0 = scmp.lt.u32.totalorder %s3427_s24, %s4196_s21 }
0x1e68   :  { %p3433_p1 = pnand %p3431_p0, %p3428_p13 }
0x1e6a   :  { %3436 = shalt.err (!%p3433_p1)
}
0x1e6b   :  { %2713 = dma.vmem_to_hbm [thread:$0]  %s2711_s15, 32, %s4196_s21, [#allocation3]  }
0x1e6c   :  { %3437 = dma.done.wait [#allocation3], 32  }
0x1e6d   :  { %3438 = vsyncadd [#allocation3], 4294967264 }
0x1e6e   :  { %3439 = dma.done.wait [#allocation5], 32  }
0x1e6f   :  { %3440 = vsyncadd [#allocation5], 4294967264 }
0x1e70   :  { %2730 = vsyncpa [#allocation3], 1 }
0x1e71   :  { %2731 = vsyncpa [#allocation5], 1 }

</bundles_post_ra>
